<compile_context>
chip_gen: v7x
topology: tpu7x:2x2x1
jax: 0.10.0
libtpu: 0.0.40
codegen_flags: <defaults>
</compile_context>

<pallas_src>
import jax
import jax.numpy as jnp
from jax import lax
from jax.experimental import pallas as pl
from jax.experimental.pallas import tpu as pltpu

NUM_HEADS = 8  # Attention(num_heads=8), out_dim=128 -> head_dim=16


# ---------------------------------------------------------------------------
# Fused backbone kernel: 4 x [Conv1d('valid') + BN(eval, folded) + ReLU + MaxPool1d(2,1)]
# with the attention-derived position weighting applied between block 1 and block 2.
# Everything for one batch element lives in VMEM for the whole pipeline.
# ---------------------------------------------------------------------------
def _conv_block(x, w_ref, scale_ref, shift_ref, K):
    """Conv1d(K,'valid') + folded BatchNorm + ReLU + MaxPool1d(2,1) on one (L, Cin) slab."""
    Lc = x.shape[0] - K + 1
    # fold the K taps into one deep MXU contraction: (Lc, K*Cin) @ (K*Cin, Cout)
    xk = jnp.concatenate([x[j:j + Lc, :] for j in range(K)], axis=1)
    y = jnp.dot(xk.astype(jnp.bfloat16), w_ref[...].astype(jnp.bfloat16),
                preferred_element_type=jnp.float32)
    y = y * scale_ref[0] + shift_ref[0]            # conv bias + BatchNorm(eval) folded (f32)
    y = jnp.maximum(y, 0.0)                        # ReLU
    return jnp.maximum(y[:-1, :], y[1:, :])        # MaxPool1d(kernel=2, stride=1)


def _attn_scale(x, wqk_ref):
    """h_matrix * x: softmax(q k^T) -> mean over heads -> sum over queries -> per-pos scale."""
    N, C = x.shape
    D = C // NUM_HEADS
    scale = D ** -0.5
    xb = x.astype(jnp.bfloat16)
    # fused q/k projection: one (N, C) x (C, 2C) matmul instead of two (N, C) x (C, C)
    qk = jnp.dot(xb, wqk_ref[...].astype(jnp.bfloat16), preferred_element_type=jnp.float32)
    q = qk[:, :C] * scale                          # fold the qk scale into q once
    k = qk[:, C:]
    wsum = jnp.zeros((N, 1), jnp.float32)
    for h in range(NUM_HEADS):
        qh = q[:, h * D:(h + 1) * D]
        kh = k[:, h * D:(h + 1) * D]
        # st[j, i] = <k_j, q_i> — transposed layout so the softmax over keys is a sublane
        # reduction and the query-sum lands directly in an (N, 1) column (no transposes).
        st = lax.dot_general(kh, qh, (((1,), (1,)), ((), ())),
                             preferred_element_type=jnp.float32)
        st = st - jnp.max(st, axis=0, keepdims=True)
        e = jnp.exp(st)
        p = e * pl.reciprocal(jnp.sum(e, axis=0, keepdims=True), approx=True)  # EUP, not VALU
        wsum = wsum + jnp.sum(p, axis=1, keepdims=True)                        # sum over queries
    return x * (wsum * (1.0 / NUM_HEADS))                                      # h_matrix * x


def _make_backbone_kernel(K):
    def kernel(x_ref,
               w0_ref, s0_ref, t0_ref,
               w1_ref, s1_ref, t1_ref,
               wqk_ref,
               w2_ref, s2_ref, t2_ref,
               w3_ref, s3_ref, t3_ref,
               o_ref):
        h = x_ref[0]                                   # (L, Cin) f32
        h = _conv_block(h, w0_ref, s0_ref, t0_ref, K)  # (L -  K,  64)
        h = _conv_block(h, w1_ref, s1_ref, t1_ref, K)  # (L - 2K, 128)
        h = _attn_scale(h, wqk_ref)                    # h_matrix * x
        h = _conv_block(h, w2_ref, s2_ref, t2_ref, K)  # (L - 3K, 256)
        h = _conv_block(h, w3_ref, s3_ref, t3_ref, K)  # (L - 4K, 128)
        o_ref[0] = h
    return kernel


def backbone(x, p):
    """Fused conv0 -> conv1 -> attention -> conv2 -> conv3; single HBM round trip."""
    # TODO(synk): for very long sequences on v7x (32 MiB scoped VMEM) tile the L axis with a
    # K+1-row halo instead of blocking the full (1, L, C) slab.
    B, L, cin = x.shape
    K = p['ksize']
    Lout = L - 4 * K
    w0, s0, t0 = p['conv0']
    w1, s1, t1 = p['conv1']
    w2, s2, t2 = p['conv2']
    w3, s3, t3 = p['conv3']
    cfinal = w3.shape[1]

    def full(a):  # whole-array block, constant across the batch grid
        return pl.BlockSpec(a.shape, lambda b: (0,) * a.ndim)

    return pl.pallas_call(
        _make_backbone_kernel(K),
        out_shape=jax.ShapeDtypeStruct((B, Lout, cfinal), jnp.float32),
        grid=(B,),
        in_specs=[pl.BlockSpec((1, L, cin), lambda b: (b, 0, 0)),
                  full(w0), full(s0), full(t0),
                  full(w1), full(s1), full(t1),
                  full(p['wqk']),
                  full(w2), full(s2), full(t2),
                  full(w3), full(s3), full(t3)],
        out_specs=pl.BlockSpec((1, Lout, cfinal), lambda b: (b, 0, 0)),
        compiler_params=pltpu.CompilerParams(dimension_semantics=("parallel",)),
    )(x, w0, s0, t0, w1, s1, t1, p['wqk'], w2, s2, t2, w3, s3, t3)


# ---------------------------------------------------------------------------
# Head: inp Linear (no bias) -> bidirectional GRU (1 layer) -> mean over the GRU "batch"
# axis -> OutLayer (Linear+ReLU+Linear) -> Sigmoid.
#
# NOTE: nn.GRU is created without batch_first, so the PyTorch forward feeds it a (B, S, M)
# tensor that the GRU interprets as (time=B, batch=S, features=M).  We reproduce exactly
# that: the recurrence runs over axis 0 (the model batch axis).
# TODO(synk): multi-layer GRU (params.rnn_n_layers > 1) not implemented; demo uses 1 layer.
# ---------------------------------------------------------------------------
def _head_kernel(x_ref, winp_ref,
                 wih_f_ref, whh_f_ref, bih_f_ref, bhh_f_ref,
                 wih_b_ref, whh_b_ref, bih_b_ref, bhh_b_ref,
                 w1_ref, b1_ref, w2_ref, b2_ref,
                 act_ref, raw_ref,
                 gi_f_ref, gi_b_ref, out_f_ref, out_b_ref, hf_ref, hb_ref):
    T, S, C = x_ref.shape                      # T = model batch (GRU time), S = GRU batch
    M = winp_ref.shape[1]

    # Hoist the input-side matmuls out of the serial recurrence: one lane-dense matmul each.
    x_flat = x_ref[...].reshape(T * S, C)
    xin = jnp.dot(x_flat, winp_ref[...], preferred_element_type=jnp.float32)    # self.inp
    gi_f_ref[...] = (jnp.dot(xin, wih_f_ref[...], preferred_element_type=jnp.float32)
                     + bih_f_ref[0]).reshape(T, S, 3 * M)
    gi_b_ref[...] = (jnp.dot(xin, wih_b_ref[...], preferred_element_type=jnp.float32)
                     + bih_b_ref[0]).reshape(T, S, 3 * M)

    # hoist loop-invariant weight/bias loads out of the recurrence
    whh_f = whh_f_ref[...]; bhh_f = bhh_f_ref[0]
    whh_b = whh_b_ref[...]; bhh_b = bhh_b_ref[0]

    hf_ref[...] = jnp.zeros_like(hf_ref)
    hb_ref[...] = jnp.zeros_like(hb_ref)

    def cell(gi, h, whh, bhh):                 # PyTorch GRUCell equations, gate order [r|z|n]
        gh = jnp.dot(h, whh, preferred_element_type=jnp.float32) + bhh
        r = jax.nn.sigmoid(gi[:, :M] + gh[:, :M])
        z = jax.nn.sigmoid(gi[:, M:2 * M] + gh[:, M:2 * M])
        n = jnp.tanh(gi[:, 2 * M:] + r * gh[:, 2 * M:])
        return (1.0 - z) * n + z * h

    # Forward step t and backward step T-1-t interleaved in one serial loop: the two
    # independent directions hide each other's h->h dependency latency.
    @pl.loop(0, T, unroll=True)
    def _(t):
        tb = T - 1 - t
        hf = cell(gi_f_ref[t], hf_ref[...], whh_f, bhh_f)
        hb = cell(gi_b_ref[tb], hb_ref[...], whh_b, bhh_b)
        hf_ref[...] = hf
        hb_ref[...] = hb
        out_f_ref[t] = hf
        out_b_ref[tb] = hb

    # x.transpose(1,2).mean(-1): per-time-step mean over S, fwd/bwd concatenated -> (T, 2M)
    inv_s = 1.0 / S
    feats = jnp.concatenate([jnp.sum(out_f_ref[...], axis=1) * inv_s,
                             jnp.sum(out_b_ref[...], axis=1) * inv_s], axis=-1)

    # OutLayer: Linear + ReLU + (Dropout=id) + Linear
    h1 = jnp.maximum(jnp.dot(feats, w1_ref[...], preferred_element_type=jnp.float32)
                     + b1_ref[0], 0.0)
    raw = jnp.dot(h1, w2_ref[...], preferred_element_type=jnp.float32) + b2_ref[0]
    raw_ref[...] = raw
    # final activation: ACTIVATION_FUNCTIONS[task] is not defined in the snippet;
    # demo uses a Sigmoid ('humor'/'reaction'-style task).
    act_ref[...] = jax.nn.sigmoid(raw)


def head(x, p):
    T, S, C = x.shape
    M = p['winp'].shape[1]
    nt = p['w2'].shape[1]
    return pl.pallas_call(
        _head_kernel,
        out_shape=(jax.ShapeDtypeStruct((T, nt), jnp.float32),
                   jax.ShapeDtypeStruct((T, nt), jnp.float32)),
        scratch_shapes=[pltpu.VMEM((T, S, 3 * M), jnp.float32),   # gi_f
                        pltpu.VMEM((T, S, 3 * M), jnp.float32),   # gi_b
                        pltpu.VMEM((T, S, M), jnp.float32),       # out_f
                        pltpu.VMEM((T, S, M), jnp.float32),       # out_b
                        pltpu.VMEM((S, M), jnp.float32),          # h fwd
                        pltpu.VMEM((S, M), jnp.float32)],         # h bwd
    )(x, p['winp'],
      p['wih_f'], p['whh_f'], p['bih_f'], p['bhh_f'],
      p['wih_b'], p['whh_b'], p['bih_b'], p['bhh_b'],
      p['w1'], p['b1'], p['w2'], p['b2'])


# ---------------------------------------------------------------------------
# Full forward
# ---------------------------------------------------------------------------
def crnn_attn_forward(x, x_len, p):
    """x: (batch, seq_len, input_channels); x_len unused (parity with the PyTorch forward)."""
    del x_len
    h = backbone(x, p)            # fused conv0 -> conv1 -> attention -> conv2 -> conv3
    act, raw = head(h, p)         # (B, n_targets) x 2
    return act, raw


# ---------------------------------------------------------------------------
# Deterministic parameter construction (synthetic; mirrors the module's shapes)
# ---------------------------------------------------------------------------
def init_params(key, d_in, ksize, model_dim, d_fc_out, n_targets):
    keys = jax.random.split(key, 64)
    it = iter(keys)

    def nrm(shape, std):
        return std * jax.random.normal(next(it), shape, jnp.float32)

    def conv_params(cin, cout):
        w = nrm((ksize, cin, cout), (cin * ksize) ** -0.5)        # Conv1d weight (K, Cin, Cout)
        bias = nrm((cout,), 0.1)                                  # Conv1d bias
        gamma = 1.0 + nrm((cout,), 0.1)                           # BatchNorm1d (eval mode)
        beta = nrm((cout,), 0.1)
        rmean = nrm((cout,), 0.1)
        rvar = jnp.abs(1.0 + nrm((cout,), 0.1))
        inv = gamma / jnp.sqrt(rvar + 1e-5)
        scale = inv.reshape(1, cout)
        shift = ((bias - rmean) * inv + beta).reshape(1, cout)    # conv-bias + BN folded
        return w.reshape(ksize * cin, cout), scale, shift         # K taps pre-flattened

    p = {'ksize': ksize}
    p['conv0'] = conv_params(d_in, 64)
    p['conv1'] = conv_params(64, 128)
    p['conv2'] = conv_params(128, 256)
    p['conv3'] = conv_params(256, 128)
    wq = nrm((128, 128), 128 ** -0.5)            # Attention.q (transposed, bias=False)
    wk = nrm((128, 128), 128 ** -0.5)            # "k" half of Attention.kv (transposed)
    p['wq'], p['wk'] = wq, wk
    p['wqk'] = jnp.concatenate([wq, wk], axis=1)  # fused q/k projection weight (C, 2C)
    p['winp'] = nrm((128, model_dim), 128 ** -0.5)  # self.inp, bias=False
    M = model_dim
    for d in ('f', 'b'):                          # bidirectional GRU, single layer
        p[f'wih_{d}'] = nrm((M, 3 * M), M ** -0.5)
        p[f'whh_{d}'] = nrm((M, 3 * M), M ** -0.5)
        p[f'bih_{d}'] = nrm((1, 3 * M), 0.05)
        p[f'bhh_{d}'] = nrm((1, 3 * M), 0.05)
    p['w1'] = nrm((2 * M, d_fc_out), (2 * M) ** -0.5)       # OutLayer.fc_1
    p['b1'] = nrm((1, d_fc_out), 0.05)
    p['w2'] = nrm((d_fc_out, n_targets), d_fc_out ** -0.5)  # OutLayer.fc_2
    p['b2'] = jnp.zeros((1, n_targets), jnp.float32)        # nn.init.constant_(bias, 0.0)
    return p


# ---------------------------------------------------------------------------
# Pure-JAX f32 reference (mirror of the PyTorch semantics) for a sanity check
# ---------------------------------------------------------------------------
def reference_forward(x, p, model_dim):
    K = p['ksize']

    def conv_block_ref(h, wflat, scale, shift):
        cin = h.shape[2]
        w = wflat.reshape(K, cin, wflat.shape[1])
        Lc = h.shape[1] - K + 1
        acc = jnp.zeros((h.shape[0], Lc, w.shape[2]), jnp.float32)
        for j in range(K):
            acc = acc + jnp.einsum('blc,cd->bld', h[:, j:j + Lc, :], w[j])
        y = jnp.maximum(acc * scale[0] + shift[0], 0.0)
        return jnp.maximum(y[:, :-1, :], y[:, 1:, :])

    h = conv_block_ref(x, *p['conv0'])
    h = conv_block_ref(h, *p['conv1'])
    B, N, C = h.shape
    D = C // NUM_HEADS
    q = (h @ p['wq']).reshape(B, N, NUM_HEADS, D)
    k = (h @ p['wk']).reshape(B, N, NUM_HEADS, D)
    attn = jnp.einsum('bihd,bjhd->bhij', q, k) * (D ** -0.5)
    pr = jax.nn.softmax(attn, axis=-1)
    wgt = jnp.sum(jnp.mean(pr, axis=1), axis=-2)       # mean over heads, sum over queries
    h = h * wgt[:, :, None]
    h = conv_block_ref(h, *p['conv2'])
    h = conv_block_ref(h, *p['conv3'])

    M = model_dim
    xin = h @ p['winp']                                # (T=B, S, M); GRU scans over axis 0

    def gru_dir(wih, whh, bih, bhh, reverse):
        T, S = xin.shape[0], xin.shape[1]
        hcur = jnp.zeros((S, M), jnp.float32)
        outs = [None] * T
        order = range(T - 1, -1, -1) if reverse else range(T)
        for t in order:
            gi = xin[t] @ wih + bih[0]
            gh = hcur @ whh + bhh[0]
            r = jax.nn.sigmoid(gi[:, :M] + gh[:, :M])
            z = jax.nn.sigmoid(gi[:, M:2 * M] + gh[:, M:2 * M])
            n = jnp.tanh(gi[:, 2 * M:] + r * gh[:, 2 * M:])
            hcur = (1.0 - z) * n + z * hcur
            outs[t] = hcur
        return jnp.stack(outs, axis=0)

    of = gru_dir(p['wih_f'], p['whh_f'], p['bih_f'], p['bhh_f'], False)
    ob = gru_dir(p['wih_b'], p['whh_b'], p['bih_b'], p['bhh_b'], True)
    out = jnp.concatenate([of, ob], axis=-1)           # (T, S, 2M)
    feats = jnp.mean(out, axis=1)                      # == x.transpose(1,2).mean(-1)
    h1 = jnp.maximum(feats @ p['w1'] + p['b1'][0], 0.0)
    raw = h1 @ p['w2'] + p['b2'][0]
    return jax.nn.sigmoid(raw), raw


if __name__ == "__main__":
    # Small demo "params": d_in=4, kernel_size=3, model_dim=32, rnn_bi=True,
    # rnn_n_layers=1, d_fc_out=16, n_targets=1, task -> Sigmoid.
    B, L, D_IN = 2, 20, 4
    KSIZE, MODEL_DIM, D_FC_OUT, N_TARGETS = 3, 32, 16, 1

    root = jax.random.PRNGKey(0)
    k_x, k_p = jax.random.split(root)
    x = jax.random.normal(k_x, (B, L, D_IN), jnp.float32)     # (batch, seq_len, input_channels)
    x_len = jnp.full((B,), L, jnp.int32)                      # unused, signature parity
    params = init_params(k_p, D_IN, KSIZE, MODEL_DIM, D_FC_OUT, N_TARGETS)

    act, raw = crnn_attn_forward(x, x_len, params)
    jax.block_until_ready((act, raw))

    act_ref, raw_ref = reference_forward(x, params, MODEL_DIM)
    assert act.shape == (B, N_TARGETS) and raw.shape == (B, N_TARGETS)
    # backbone matmuls run with bf16 MXU inputs (f32 accumulation) -> compare at 5e-2
    assert jnp.allclose(act, act_ref, atol=5e-2, rtol=5e-2)
    assert jnp.allclose(raw, raw_ref, atol=5e-2, rtol=5e-2)

    print("KERNEL_OK")
</pallas_src>

<mosaic_0001>
module attributes {stable_mosaic.version = 11 : i64} {
  func.func @kernel(%arg0: i32, %arg1: memref<1x20x4xf32, #tpu.memory_space<vmem>>, %arg2: memref<12x64xf32, #tpu.memory_space<vmem>>, %arg3: memref<1x64xf32, #tpu.memory_space<vmem>>, %arg4: memref<1x64xf32, #tpu.memory_space<vmem>>, %arg5: memref<192x128xf32, #tpu.memory_space<vmem>>, %arg6: memref<1x128xf32, #tpu.memory_space<vmem>>, %arg7: memref<1x128xf32, #tpu.memory_space<vmem>>, %arg8: memref<128x256xf32, #tpu.memory_space<vmem>>, %arg9: memref<384x256xf32, #tpu.memory_space<vmem>>, %arg10: memref<1x256xf32, #tpu.memory_space<vmem>>, %arg11: memref<1x256xf32, #tpu.memory_space<vmem>>, %arg12: memref<768x128xf32, #tpu.memory_space<vmem>>, %arg13: memref<1x128xf32, #tpu.memory_space<vmem>>, %arg14: memref<1x128xf32, #tpu.memory_space<vmem>>, %arg15: memref<1x8x128xf32, #tpu.memory_space<vmem>>) attributes {dimension_semantics = [#tpu.dimension_semantics<parallel>], iteration_bounds = array<i64: 2>, scalar_prefetch = 0 : i64, scratch_operands = 0 : i64, tpu.core_type = #tpu.core_type<tc>, window_params = [{transform_indices = @transform_0, window_bounds = array<i64: 1, 20, 4>}, {pipeline_mode = #tpu.pipeline_mode<synchronous>, transform_indices = @transform_1, window_bounds = array<i64: 12, 64>}, {pipeline_mode = #tpu.pipeline_mode<synchronous>, transform_indices = @transform_2, window_bounds = array<i64: 1, 64>}, {pipeline_mode = #tpu.pipeline_mode<synchronous>, transform_indices = @transform_3, window_bounds = array<i64: 1, 64>}, {pipeline_mode = #tpu.pipeline_mode<synchronous>, transform_indices = @transform_4, window_bounds = array<i64: 192, 128>}, {pipeline_mode = #tpu.pipeline_mode<synchronous>, transform_indices = @transform_5, window_bounds = array<i64: 1, 128>}, {pipeline_mode = #tpu.pipeline_mode<synchronous>, transform_indices = @transform_6, window_bounds = array<i64: 1, 128>}, {pipeline_mode = #tpu.pipeline_mode<synchronous>, transform_indices = @transform_7, window_bounds = array<i64: 128, 256>}, {pipeline_mode = #tpu.pipeline_mode<synchronous>, transform_indices = @transform_8, window_bounds = array<i64: 384, 256>}, {pipeline_mode = #tpu.pipeline_mode<synchronous>, transform_indices = @transform_9, window_bounds = array<i64: 1, 256>}, {pipeline_mode = #tpu.pipeline_mode<synchronous>, transform_indices = @transform_10, window_bounds = array<i64: 1, 256>}, {pipeline_mode = #tpu.pipeline_mode<synchronous>, transform_indices = @transform_11, window_bounds = array<i64: 768, 128>}, {pipeline_mode = #tpu.pipeline_mode<synchronous>, transform_indices = @transform_12, window_bounds = array<i64: 1, 128>}, {pipeline_mode = #tpu.pipeline_mode<synchronous>, transform_indices = @transform_13, window_bounds = array<i64: 1, 128>}, {transform_indices = @transform_14, window_bounds = array<i64: 1, 8, 128>}]} {
    %c0 = arith.constant 0 : index
    %c0_0 = arith.constant 0 : index
    %c0_1 = arith.constant 0 : index
    %0 = vector.load %arg1[%c0, %c0_0, %c0_1] : memref<1x20x4xf32, #tpu.memory_space<vmem>>, vector<1x20x4xf32>
    %1 = vector.shape_cast %0 : vector<1x20x4xf32> to vector<20x4xf32>
    %2 = vector.extract_strided_slice %1 {offsets = [0, 0], sizes = [18, 4], strides = [1, 1]} : vector<20x4xf32> to vector<18x4xf32>
    %3 = vector.extract_strided_slice %1 {offsets = [1, 0], sizes = [18, 4], strides = [1, 1]} : vector<20x4xf32> to vector<18x4xf32>
    %4 = vector.extract_strided_slice %1 {offsets = [2, 0], sizes = [18, 4], strides = [1, 1]} : vector<20x4xf32> to vector<18x4xf32>
    %5 = tpu.concatenate %2, %3, %4 in 1 : vector<18x4xf32>, vector<18x4xf32>, vector<18x4xf32> -> vector<18x12xf32>
    %6 = arith.truncf %5 : vector<18x12xf32> to vector<18x12xbf16>
    %c0_2 = arith.constant 0 : index
    %c0_3 = arith.constant 0 : index
    %7 = vector.load %arg2[%c0_2, %c0_3] : memref<12x64xf32, #tpu.memory_space<vmem>>, vector<12x64xf32>
    %8 = arith.truncf %7 : vector<12x64xf32> to vector<12x64xbf16>
    %cst = arith.constant dense<0.000000e+00> : vector<18x64xf32>
    %9 = tpu.matmul %6, %8, %cst {dimension_numbers = #tpu.dot_dimension_numbers<[1], [0], [0], [1], [0, 0, 1, 1], [], []>} : vector<18x12xbf16>, vector<12x64xbf16>, vector<18x64xf32> -> vector<18x64xf32>
    %c0_4 = arith.constant 0 : index
    %c0_5 = arith.constant 0 : index
    %10 = vector.load %arg3[%c0_4, %c0_5] : memref<1x64xf32, #tpu.memory_space<vmem>>, vector<1x64xf32>
    %11 = vector.shape_cast %10 : vector<1x64xf32> to vector<64xf32>
    %12 = vector.shape_cast %11 : vector<64xf32> to vector<1x64xf32>
    %13 = vector.broadcast %12 : vector<1x64xf32> to vector<18x64xf32>
    %14 = arith.mulf %9, %13 : vector<18x64xf32>
    %c0_6 = arith.constant 0 : index
    %c0_7 = arith.constant 0 : index
    %15 = vector.load %arg4[%c0_6, %c0_7] : memref<1x64xf32, #tpu.memory_space<vmem>>, vector<1x64xf32>
    %16 = vector.shape_cast %15 : vector<1x64xf32> to vector<64xf32>
    %17 = vector.shape_cast %16 : vector<64xf32> to vector<1x64xf32>
    %18 = vector.broadcast %17 : vector<1x64xf32> to vector<18x64xf32>
    %19 = arith.addf %14, %18 : vector<18x64xf32>
    %cst_8 = arith.constant 0.000000e+00 : f32
    %20 = vector.broadcast %cst_8 : f32 to vector<18x64xf32>
    %21 = arith.maximumf %19, %20 : vector<18x64xf32>
    %22 = vector.extract_strided_slice %21 {offsets = [0, 0], sizes = [17, 64], strides = [1, 1]} : vector<18x64xf32> to vector<17x64xf32>
    %23 = vector.extract_strided_slice %21 {offsets = [1, 0], sizes = [17, 64], strides = [1, 1]} : vector<18x64xf32> to vector<17x64xf32>
    %24 = arith.maximumf %22, %23 : vector<17x64xf32>
    %25 = vector.extract_strided_slice %24 {offsets = [0, 0], sizes = [15, 64], strides = [1, 1]} : vector<17x64xf32> to vector<15x64xf32>
    %26 = vector.extract_strided_slice %24 {offsets = [1, 0], sizes = [15, 64], strides = [1, 1]} : vector<17x64xf32> to vector<15x64xf32>
    %27 = vector.extract_strided_slice %24 {offsets = [2, 0], sizes = [15, 64], strides = [1, 1]} : vector<17x64xf32> to vector<15x64xf32>
    %28 = tpu.concatenate %25, %26, %27 in 1 : vector<15x64xf32>, vector<15x64xf32>, vector<15x64xf32> -> vector<15x192xf32>
    %29 = arith.truncf %28 : vector<15x192xf32> to vector<15x192xbf16>
    %c0_9 = arith.constant 0 : index
    %c0_10 = arith.constant 0 : index
    %30 = vector.load %arg5[%c0_9, %c0_10] : memref<192x128xf32, #tpu.memory_space<vmem>>, vector<192x128xf32>
    %31 = arith.truncf %30 : vector<192x128xf32> to vector<192x128xbf16>
    %cst_11 = arith.constant dense<0.000000e+00> : vector<15x128xf32>
    %32 = tpu.matmul %29, %31, %cst_11 {dimension_numbers = #tpu.dot_dimension_numbers<[1], [0], [0], [1], [0, 0, 1, 1], [], []>} : vector<15x192xbf16>, vector<192x128xbf16>, vector<15x128xf32> -> vector<15x128xf32>
    %c0_12 = arith.constant 0 : index
    %c0_13 = arith.constant 0 : index
    %33 = vector.load %arg6[%c0_12, %c0_13] : memref<1x128xf32, #tpu.memory_space<vmem>>, vector<1x128xf32>
    %34 = vector.shape_cast %33 : vector<1x128xf32> to vector<128xf32>
    %35 = vector.shape_cast %34 : vector<128xf32> to vector<1x128xf32>
    %36 = vector.broadcast %35 : vector<1x128xf32> to vector<15x128xf32>
    %37 = arith.mulf %32, %36 : vector<15x128xf32>
    %c0_14 = arith.constant 0 : index
    %c0_15 = arith.constant 0 : index
    %38 = vector.load %arg7[%c0_14, %c0_15] : memref<1x128xf32, #tpu.memory_space<vmem>>, vector<1x128xf32>
    %39 = vector.shape_cast %38 : vector<1x128xf32> to vector<128xf32>
    %40 = vector.shape_cast %39 : vector<128xf32> to vector<1x128xf32>
    %41 = vector.broadcast %40 : vector<1x128xf32> to vector<15x128xf32>
    %42 = arith.addf %37, %41 : vector<15x128xf32>
    %cst_16 = arith.constant 0.000000e+00 : f32
    %43 = vector.broadcast %cst_16 : f32 to vector<15x128xf32>
    %44 = arith.maximumf %42, %43 : vector<15x128xf32>
    %45 = vector.extract_strided_slice %44 {offsets = [0, 0], sizes = [14, 128], strides = [1, 1]} : vector<15x128xf32> to vector<14x128xf32>
    %46 = vector.extract_strided_slice %44 {offsets = [1, 0], sizes = [14, 128], strides = [1, 1]} : vector<15x128xf32> to vector<14x128xf32>
    %47 = arith.maximumf %45, %46 : vector<14x128xf32>
    %48 = arith.truncf %47 : vector<14x128xf32> to vector<14x128xbf16>
    %c0_17 = arith.constant 0 : index
    %c0_18 = arith.constant 0 : index
    %49 = vector.load %arg8[%c0_17, %c0_18] : memref<128x256xf32, #tpu.memory_space<vmem>>, vector<128x256xf32>
    %50 = arith.truncf %49 : vector<128x256xf32> to vector<128x256xbf16>
    %cst_19 = arith.constant dense<0.000000e+00> : vector<14x256xf32>
    %51 = tpu.matmul %48, %50, %cst_19 {dimension_numbers = #tpu.dot_dimension_numbers<[1], [0], [0], [1], [0, 0, 1, 1], [], []>} : vector<14x128xbf16>, vector<128x256xbf16>, vector<14x256xf32> -> vector<14x256xf32>
    %52 = vector.extract_strided_slice %51 {offsets = [0, 0], sizes = [14, 128], strides = [1, 1]} : vector<14x256xf32> to vector<14x128xf32>
    %cst_20 = arith.constant 2.500000e-01 : f32
    %53 = vector.broadcast %cst_20 : f32 to vector<14x128xf32>
    %54 = arith.mulf %52, %53 : vector<14x128xf32>
    %55 = vector.extract_strided_slice %51 {offsets = [0, 128], sizes = [14, 128], strides = [1, 1]} : vector<14x256xf32> to vector<14x128xf32>
    %cst_21 = arith.constant 0.000000e+00 : f32
    %56 = vector.broadcast %cst_21 : f32 to vector<14x1xf32>
    %57 = vector.extract_strided_slice %54 {offsets = [0, 0], sizes = [14, 16], strides = [1, 1]} : vector<14x128xf32> to vector<14x16xf32>
    %58 = vector.extract_strided_slice %55 {offsets = [0, 0], sizes = [14, 16], strides = [1, 1]} : vector<14x128xf32> to vector<14x16xf32>
    %cst_22 = arith.constant dense<0.000000e+00> : vector<14x14xf32>
    %59 = tpu.matmul %58, %57, %cst_22 {dimension_numbers = #tpu.dot_dimension_numbers<[1], [1], [0], [0], [0, 0, 1, 0], [], []>} : vector<14x16xf32>, vector<14x16xf32>, vector<14x14xf32> -> vector<14x14xf32>
    %cst_23 = arith.constant dense<0xFF800000> : vector<14xf32>
    %60 = vector.multi_reduction <maximumf>, %59, %cst_23 [0] : vector<14x14xf32> to vector<14xf32>
    %61 = vector.shape_cast %60 : vector<14xf32> to vector<1x14xf32>
    %62 = vector.broadcast %61 : vector<1x14xf32> to vector<14x14xf32>
    %63 = arith.subf %59, %62 : vector<14x14xf32>
    %64 = math.exp %63 : vector<14x14xf32>
    %cst_24 = arith.constant dense<0.000000e+00> : vector<14xf32>
    %65 = vector.multi_reduction <add>, %64, %cst_24 [0] : vector<14x14xf32> to vector<14xf32>
    %66 = vector.shape_cast %65 : vector<14xf32> to vector<1x14xf32>
    %67 = tpu.reciprocal %66 {approx = true} : vector<1x14xf32> -> vector<1x14xf32>
    %68 = vector.broadcast %67 : vector<1x14xf32> to vector<14x14xf32>
    %69 = arith.mulf %64, %68 : vector<14x14xf32>
    %cst_25 = arith.constant dense<0.000000e+00> : vector<14xf32>
    %70 = vector.multi_reduction <add>, %69, %cst_25 [1] : vector<14x14xf32> to vector<14xf32>
    %71 = vector.shape_cast %70 : vector<14xf32> to vector<14x1xf32>
    %72 = arith.addf %56, %71 : vector<14x1xf32>
    %73 = vector.extract_strided_slice %54 {offsets = [0, 16], sizes = [14, 16], strides = [1, 1]} : vector<14x128xf32> to vector<14x16xf32>
    %74 = vector.extract_strided_slice %55 {offsets = [0, 16], sizes = [14, 16], strides = [1, 1]} : vector<14x128xf32> to vector<14x16xf32>
    %cst_26 = arith.constant dense<0.000000e+00> : vector<14x14xf32>
    %75 = tpu.matmul %74, %73, %cst_26 {dimension_numbers = #tpu.dot_dimension_numbers<[1], [1], [0], [0], [0, 0, 1, 0], [], []>} : vector<14x16xf32>, vector<14x16xf32>, vector<14x14xf32> -> vector<14x14xf32>
    %cst_27 = arith.constant dense<0xFF800000> : vector<14xf32>
    %76 = vector.multi_reduction <maximumf>, %75, %cst_27 [0] : vector<14x14xf32> to vector<14xf32>
    %77 = vector.shape_cast %76 : vector<14xf32> to vector<1x14xf32>
    %78 = vector.broadcast %77 : vector<1x14xf32> to vector<14x14xf32>
    %79 = arith.subf %75, %78 : vector<14x14xf32>
    %80 = math.exp %79 : vector<14x14xf32>
    %cst_28 = arith.constant dense<0.000000e+00> : vector<14xf32>
    %81 = vector.multi_reduction <add>, %80, %cst_28 [0] : vector<14x14xf32> to vector<14xf32>
    %82 = vector.shape_cast %81 : vector<14xf32> to vector<1x14xf32>
    %83 = tpu.reciprocal %82 {approx = true} : vector<1x14xf32> -> vector<1x14xf32>
    %84 = vector.broadcast %83 : vector<1x14xf32> to vector<14x14xf32>
    %85 = arith.mulf %80, %84 : vector<14x14xf32>
    %cst_29 = arith.constant dense<0.000000e+00> : vector<14xf32>
    %86 = vector.multi_reduction <add>, %85, %cst_29 [1] : vector<14x14xf32> to vector<14xf32>
    %87 = vector.shape_cast %86 : vector<14xf32> to vector<14x1xf32>
    %88 = arith.addf %72, %87 : vector<14x1xf32>
    %89 = vector.extract_strided_slice %54 {offsets = [0, 32], sizes = [14, 16], strides = [1, 1]} : vector<14x128xf32> to vector<14x16xf32>
    %90 = vector.extract_strided_slice %55 {offsets = [0, 32], sizes = [14, 16], strides = [1, 1]} : vector<14x128xf32> to vector<14x16xf32>
    %cst_30 = arith.constant dense<0.000000e+00> : vector<14x14xf32>
    %91 = tpu.matmul %90, %89, %cst_30 {dimension_numbers = #tpu.dot_dimension_numbers<[1], [1], [0], [0], [0, 0, 1, 0], [], []>} : vector<14x16xf32>, vector<14x16xf32>, vector<14x14xf32> -> vector<14x14xf32>
    %cst_31 = arith.constant dense<0xFF800000> : vector<14xf32>
    %92 = vector.multi_reduction <maximumf>, %91, %cst_31 [0] : vector<14x14xf32> to vector<14xf32>
    %93 = vector.shape_cast %92 : vector<14xf32> to vector<1x14xf32>
    %94 = vector.broadcast %93 : vector<1x14xf32> to vector<14x14xf32>
    %95 = arith.subf %91, %94 : vector<14x14xf32>
    %96 = math.exp %95 : vector<14x14xf32>
    %cst_32 = arith.constant dense<0.000000e+00> : vector<14xf32>
    %97 = vector.multi_reduction <add>, %96, %cst_32 [0] : vector<14x14xf32> to vector<14xf32>
    %98 = vector.shape_cast %97 : vector<14xf32> to vector<1x14xf32>
    %99 = tpu.reciprocal %98 {approx = true} : vector<1x14xf32> -> vector<1x14xf32>
    %100 = vector.broadcast %99 : vector<1x14xf32> to vector<14x14xf32>
    %101 = arith.mulf %96, %100 : vector<14x14xf32>
    %cst_33 = arith.constant dense<0.000000e+00> : vector<14xf32>
    %102 = vector.multi_reduction <add>, %101, %cst_33 [1] : vector<14x14xf32> to vector<14xf32>
    %103 = vector.shape_cast %102 : vector<14xf32> to vector<14x1xf32>
    %104 = arith.addf %88, %103 : vector<14x1xf32>
    %105 = vector.extract_strided_slice %54 {offsets = [0, 48], sizes = [14, 16], strides = [1, 1]} : vector<14x128xf32> to vector<14x16xf32>
    %106 = vector.extract_strided_slice %55 {offsets = [0, 48], sizes = [14, 16], strides = [1, 1]} : vector<14x128xf32> to vector<14x16xf32>
    %cst_34 = arith.constant dense<0.000000e+00> : vector<14x14xf32>
    %107 = tpu.matmul %106, %105, %cst_34 {dimension_numbers = #tpu.dot_dimension_numbers<[1], [1], [0], [0], [0, 0, 1, 0], [], []>} : vector<14x16xf32>, vector<14x16xf32>, vector<14x14xf32> -> vector<14x14xf32>
    %cst_35 = arith.constant dense<0xFF800000> : vector<14xf32>
    %108 = vector.multi_reduction <maximumf>, %107, %cst_35 [0] : vector<14x14xf32> to vector<14xf32>
    %109 = vector.shape_cast %108 : vector<14xf32> to vector<1x14xf32>
    %110 = vector.broadcast %109 : vector<1x14xf32> to vector<14x14xf32>
    %111 = arith.subf %107, %110 : vector<14x14xf32>
    %112 = math.exp %111 : vector<14x14xf32>
    %cst_36 = arith.constant dense<0.000000e+00> : vector<14xf32>
    %113 = vector.multi_reduction <add>, %112, %cst_36 [0] : vector<14x14xf32> to vector<14xf32>
    %114 = vector.shape_cast %113 : vector<14xf32> to vector<1x14xf32>
    %115 = tpu.reciprocal %114 {approx = true} : vector<1x14xf32> -> vector<1x14xf32>
    %116 = vector.broadcast %115 : vector<1x14xf32> to vector<14x14xf32>
    %117 = arith.mulf %112, %116 : vector<14x14xf32>
    %cst_37 = arith.constant dense<0.000000e+00> : vector<14xf32>
    %118 = vector.multi_reduction <add>, %117, %cst_37 [1] : vector<14x14xf32> to vector<14xf32>
    %119 = vector.shape_cast %118 : vector<14xf32> to vector<14x1xf32>
    %120 = arith.addf %104, %119 : vector<14x1xf32>
    %121 = vector.extract_strided_slice %54 {offsets = [0, 64], sizes = [14, 16], strides = [1, 1]} : vector<14x128xf32> to vector<14x16xf32>
    %122 = vector.extract_strided_slice %55 {offsets = [0, 64], sizes = [14, 16], strides = [1, 1]} : vector<14x128xf32> to vector<14x16xf32>
    %cst_38 = arith.constant dense<0.000000e+00> : vector<14x14xf32>
    %123 = tpu.matmul %122, %121, %cst_38 {dimension_numbers = #tpu.dot_dimension_numbers<[1], [1], [0], [0], [0, 0, 1, 0], [], []>} : vector<14x16xf32>, vector<14x16xf32>, vector<14x14xf32> -> vector<14x14xf32>
    %cst_39 = arith.constant dense<0xFF800000> : vector<14xf32>
    %124 = vector.multi_reduction <maximumf>, %123, %cst_39 [0] : vector<14x14xf32> to vector<14xf32>
    %125 = vector.shape_cast %124 : vector<14xf32> to vector<1x14xf32>
    %126 = vector.broadcast %125 : vector<1x14xf32> to vector<14x14xf32>
    %127 = arith.subf %123, %126 : vector<14x14xf32>
    %128 = math.exp %127 : vector<14x14xf32>
    %cst_40 = arith.constant dense<0.000000e+00> : vector<14xf32>
    %129 = vector.multi_reduction <add>, %128, %cst_40 [0] : vector<14x14xf32> to vector<14xf32>
    %130 = vector.shape_cast %129 : vector<14xf32> to vector<1x14xf32>
    %131 = tpu.reciprocal %130 {approx = true} : vector<1x14xf32> -> vector<1x14xf32>
    %132 = vector.broadcast %131 : vector<1x14xf32> to vector<14x14xf32>
    %133 = arith.mulf %128, %132 : vector<14x14xf32>
    %cst_41 = arith.constant dense<0.000000e+00> : vector<14xf32>
    %134 = vector.multi_reduction <add>, %133, %cst_41 [1] : vector<14x14xf32> to vector<14xf32>
    %135 = vector.shape_cast %134 : vector<14xf32> to vector<14x1xf32>
    %136 = arith.addf %120, %135 : vector<14x1xf32>
    %137 = vector.extract_strided_slice %54 {offsets = [0, 80], sizes = [14, 16], strides = [1, 1]} : vector<14x128xf32> to vector<14x16xf32>
    %138 = vector.extract_strided_slice %55 {offsets = [0, 80], sizes = [14, 16], strides = [1, 1]} : vector<14x128xf32> to vector<14x16xf32>
    %cst_42 = arith.constant dense<0.000000e+00> : vector<14x14xf32>
    %139 = tpu.matmul %138, %137, %cst_42 {dimension_numbers = #tpu.dot_dimension_numbers<[1], [1], [0], [0], [0, 0, 1, 0], [], []>} : vector<14x16xf32>, vector<14x16xf32>, vector<14x14xf32> -> vector<14x14xf32>
    %cst_43 = arith.constant dense<0xFF800000> : vector<14xf32>
    %140 = vector.multi_reduction <maximumf>, %139, %cst_43 [0] : vector<14x14xf32> to vector<14xf32>
    %141 = vector.shape_cast %140 : vector<14xf32> to vector<1x14xf32>
    %142 = vector.broadcast %141 : vector<1x14xf32> to vector<14x14xf32>
    %143 = arith.subf %139, %142 : vector<14x14xf32>
    %144 = math.exp %143 : vector<14x14xf32>
    %cst_44 = arith.constant dense<0.000000e+00> : vector<14xf32>
    %145 = vector.multi_reduction <add>, %144, %cst_44 [0] : vector<14x14xf32> to vector<14xf32>
    %146 = vector.shape_cast %145 : vector<14xf32> to vector<1x14xf32>
    %147 = tpu.reciprocal %146 {approx = true} : vector<1x14xf32> -> vector<1x14xf32>
    %148 = vector.broadcast %147 : vector<1x14xf32> to vector<14x14xf32>
    %149 = arith.mulf %144, %148 : vector<14x14xf32>
    %cst_45 = arith.constant dense<0.000000e+00> : vector<14xf32>
    %150 = vector.multi_reduction <add>, %149, %cst_45 [1] : vector<14x14xf32> to vector<14xf32>
    %151 = vector.shape_cast %150 : vector<14xf32> to vector<14x1xf32>
    %152 = arith.addf %136, %151 : vector<14x1xf32>
    %153 = vector.extract_strided_slice %54 {offsets = [0, 96], sizes = [14, 16], strides = [1, 1]} : vector<14x128xf32> to vector<14x16xf32>
    %154 = vector.extract_strided_slice %55 {offsets = [0, 96], sizes = [14, 16], strides = [1, 1]} : vector<14x128xf32> to vector<14x16xf32>
    %cst_46 = arith.constant dense<0.000000e+00> : vector<14x14xf32>
    %155 = tpu.matmul %154, %153, %cst_46 {dimension_numbers = #tpu.dot_dimension_numbers<[1], [1], [0], [0], [0, 0, 1, 0], [], []>} : vector<14x16xf32>, vector<14x16xf32>, vector<14x14xf32> -> vector<14x14xf32>
    %cst_47 = arith.constant dense<0xFF800000> : vector<14xf32>
    %156 = vector.multi_reduction <maximumf>, %155, %cst_47 [0] : vector<14x14xf32> to vector<14xf32>
    %157 = vector.shape_cast %156 : vector<14xf32> to vector<1x14xf32>
    %158 = vector.broadcast %157 : vector<1x14xf32> to vector<14x14xf32>
    %159 = arith.subf %155, %158 : vector<14x14xf32>
    %160 = math.exp %159 : vector<14x14xf32>
    %cst_48 = arith.constant dense<0.000000e+00> : vector<14xf32>
    %161 = vector.multi_reduction <add>, %160, %cst_48 [0] : vector<14x14xf32> to vector<14xf32>
    %162 = vector.shape_cast %161 : vector<14xf32> to vector<1x14xf32>
    %163 = tpu.reciprocal %162 {approx = true} : vector<1x14xf32> -> vector<1x14xf32>
    %164 = vector.broadcast %163 : vector<1x14xf32> to vector<14x14xf32>
    %165 = arith.mulf %160, %164 : vector<14x14xf32>
    %cst_49 = arith.constant dense<0.000000e+00> : vector<14xf32>
    %166 = vector.multi_reduction <add>, %165, %cst_49 [1] : vector<14x14xf32> to vector<14xf32>
    %167 = vector.shape_cast %166 : vector<14xf32> to vector<14x1xf32>
    %168 = arith.addf %152, %167 : vector<14x1xf32>
    %169 = vector.extract_strided_slice %54 {offsets = [0, 112], sizes = [14, 16], strides = [1, 1]} : vector<14x128xf32> to vector<14x16xf32>
    %170 = vector.extract_strided_slice %55 {offsets = [0, 112], sizes = [14, 16], strides = [1, 1]} : vector<14x128xf32> to vector<14x16xf32>
    %cst_50 = arith.constant dense<0.000000e+00> : vector<14x14xf32>
    %171 = tpu.matmul %170, %169, %cst_50 {dimension_numbers = #tpu.dot_dimension_numbers<[1], [1], [0], [0], [0, 0, 1, 0], [], []>} : vector<14x16xf32>, vector<14x16xf32>, vector<14x14xf32> -> vector<14x14xf32>
    %cst_51 = arith.constant dense<0xFF800000> : vector<14xf32>
    %172 = vector.multi_reduction <maximumf>, %171, %cst_51 [0] : vector<14x14xf32> to vector<14xf32>
    %173 = vector.shape_cast %172 : vector<14xf32> to vector<1x14xf32>
    %174 = vector.broadcast %173 : vector<1x14xf32> to vector<14x14xf32>
    %175 = arith.subf %171, %174 : vector<14x14xf32>
    %176 = math.exp %175 : vector<14x14xf32>
    %cst_52 = arith.constant dense<0.000000e+00> : vector<14xf32>
    %177 = vector.multi_reduction <add>, %176, %cst_52 [0] : vector<14x14xf32> to vector<14xf32>
    %178 = vector.shape_cast %177 : vector<14xf32> to vector<1x14xf32>
    %179 = tpu.reciprocal %178 {approx = true} : vector<1x14xf32> -> vector<1x14xf32>
    %180 = vector.broadcast %179 : vector<1x14xf32> to vector<14x14xf32>
    %181 = arith.mulf %176, %180 : vector<14x14xf32>
    %cst_53 = arith.constant dense<0.000000e+00> : vector<14xf32>
    %182 = vector.multi_reduction <add>, %181, %cst_53 [1] : vector<14x14xf32> to vector<14xf32>
    %183 = vector.shape_cast %182 : vector<14xf32> to vector<14x1xf32>
    %184 = arith.addf %168, %183 : vector<14x1xf32>
    %cst_54 = arith.constant 1.250000e-01 : f32
    %185 = vector.broadcast %cst_54 : f32 to vector<14x1xf32>
    %186 = arith.mulf %184, %185 : vector<14x1xf32>
    %187 = vector.broadcast %186 : vector<14x1xf32> to vector<14x128xf32>
    %188 = arith.mulf %47, %187 : vector<14x128xf32>
    %189 = vector.extract_strided_slice %188 {offsets = [0, 0], sizes = [12, 128], strides = [1, 1]} : vector<14x128xf32> to vector<12x128xf32>
    %190 = vector.extract_strided_slice %188 {offsets = [1, 0], sizes = [12, 128], strides = [1, 1]} : vector<14x128xf32> to vector<12x128xf32>
    %191 = vector.extract_strided_slice %188 {offsets = [2, 0], sizes = [12, 128], strides = [1, 1]} : vector<14x128xf32> to vector<12x128xf32>
    %192 = tpu.concatenate %189, %190, %191 in 1 : vector<12x128xf32>, vector<12x128xf32>, vector<12x128xf32> -> vector<12x384xf32>
    %193 = arith.truncf %192 : vector<12x384xf32> to vector<12x384xbf16>
    %c0_55 = arith.constant 0 : index
    %c0_56 = arith.constant 0 : index
    %194 = vector.load %arg9[%c0_55, %c0_56] : memref<384x256xf32, #tpu.memory_space<vmem>>, vector<384x256xf32>
    %195 = arith.truncf %194 : vector<384x256xf32> to vector<384x256xbf16>
    %cst_57 = arith.constant dense<0.000000e+00> : vector<12x256xf32>
    %196 = tpu.matmul %193, %195, %cst_57 {dimension_numbers = #tpu.dot_dimension_numbers<[1], [0], [0], [1], [0, 0, 1, 1], [], []>} : vector<12x384xbf16>, vector<384x256xbf16>, vector<12x256xf32> -> vector<12x256xf32>
    %c0_58 = arith.constant 0 : index
    %c0_59 = arith.constant 0 : index
    %197 = vector.load %arg10[%c0_58, %c0_59] : memref<1x256xf32, #tpu.memory_space<vmem>>, vector<1x256xf32>
    %198 = vector.shape_cast %197 : vector<1x256xf32> to vector<256xf32>
    %199 = vector.shape_cast %198 : vector<256xf32> to vector<1x256xf32>
    %200 = vector.broadcast %199 : vector<1x256xf32> to vector<12x256xf32>
    %201 = arith.mulf %196, %200 : vector<12x256xf32>
    %c0_60 = arith.constant 0 : index
    %c0_61 = arith.constant 0 : index
    %202 = vector.load %arg11[%c0_60, %c0_61] : memref<1x256xf32, #tpu.memory_space<vmem>>, vector<1x256xf32>
    %203 = vector.shape_cast %202 : vector<1x256xf32> to vector<256xf32>
    %204 = vector.shape_cast %203 : vector<256xf32> to vector<1x256xf32>
    %205 = vector.broadcast %204 : vector<1x256xf32> to vector<12x256xf32>
    %206 = arith.addf %201, %205 : vector<12x256xf32>
    %cst_62 = arith.constant 0.000000e+00 : f32
    %207 = vector.broadcast %cst_62 : f32 to vector<12x256xf32>
    %208 = arith.maximumf %206, %207 : vector<12x256xf32>
    %209 = vector.extract_strided_slice %208 {offsets = [0, 0], sizes = [11, 256], strides = [1, 1]} : vector<12x256xf32> to vector<11x256xf32>
    %210 = vector.extract_strided_slice %208 {offsets = [1, 0], sizes = [11, 256], strides = [1, 1]} : vector<12x256xf32> to vector<11x256xf32>
    %211 = arith.maximumf %209, %210 : vector<11x256xf32>
    %212 = vector.extract_strided_slice %211 {offsets = [0, 0], sizes = [9, 256], strides = [1, 1]} : vector<11x256xf32> to vector<9x256xf32>
    %213 = vector.extract_strided_slice %211 {offsets = [1, 0], sizes = [9, 256], strides = [1, 1]} : vector<11x256xf32> to vector<9x256xf32>
    %214 = vector.extract_strided_slice %211 {offsets = [2, 0], sizes = [9, 256], strides = [1, 1]} : vector<11x256xf32> to vector<9x256xf32>
    %215 = tpu.concatenate %212, %213, %214 in 1 : vector<9x256xf32>, vector<9x256xf32>, vector<9x256xf32> -> vector<9x768xf32>
    %216 = arith.truncf %215 : vector<9x768xf32> to vector<9x768xbf16>
    %c0_63 = arith.constant 0 : index
    %c0_64 = arith.constant 0 : index
    %217 = vector.load %arg12[%c0_63, %c0_64] : memref<768x128xf32, #tpu.memory_space<vmem>>, vector<768x128xf32>
    %218 = arith.truncf %217 : vector<768x128xf32> to vector<768x128xbf16>
    %cst_65 = arith.constant dense<0.000000e+00> : vector<9x128xf32>
    %219 = tpu.matmul %216, %218, %cst_65 {dimension_numbers = #tpu.dot_dimension_numbers<[1], [0], [0], [1], [0, 0, 1, 1], [], []>} : vector<9x768xbf16>, vector<768x128xbf16>, vector<9x128xf32> -> vector<9x128xf32>
    %c0_66 = arith.constant 0 : index
    %c0_67 = arith.constant 0 : index
    %220 = vector.load %arg13[%c0_66, %c0_67] : memref<1x128xf32, #tpu.memory_space<vmem>>, vector<1x128xf32>
    %221 = vector.shape_cast %220 : vector<1x128xf32> to vector<128xf32>
    %222 = vector.shape_cast %221 : vector<128xf32> to vector<1x128xf32>
    %223 = vector.broadcast %222 : vector<1x128xf32> to vector<9x128xf32>
    %224 = arith.mulf %219, %223 : vector<9x128xf32>
    %c0_68 = arith.constant 0 : index
    %c0_69 = arith.constant 0 : index
    %225 = vector.load %arg14[%c0_68, %c0_69] : memref<1x128xf32, #tpu.memory_space<vmem>>, vector<1x128xf32>
    %226 = vector.shape_cast %225 : vector<1x128xf32> to vector<128xf32>
    %227 = vector.shape_cast %226 : vector<128xf32> to vector<1x128xf32>
    %228 = vector.broadcast %227 : vector<1x128xf32> to vector<9x128xf32>
    %229 = arith.addf %224, %228 : vector<9x128xf32>
    %cst_70 = arith.constant 0.000000e+00 : f32
    %230 = vector.broadcast %cst_70 : f32 to vector<9x128xf32>
    %231 = arith.maximumf %229, %230 : vector<9x128xf32>
    %232 = vector.extract_strided_slice %231 {offsets = [0, 0], sizes = [8, 128], strides = [1, 1]} : vector<9x128xf32> to vector<8x128xf32>
    %233 = vector.extract_strided_slice %231 {offsets = [1, 0], sizes = [8, 128], strides = [1, 1]} : vector<9x128xf32> to vector<8x128xf32>
    %234 = arith.maximumf %232, %233 : vector<8x128xf32>
    %c0_71 = arith.constant 0 : index
    %c0_72 = arith.constant 0 : index
    %c0_73 = arith.constant 0 : index
    %235 = vector.load %arg15[%c0_71, %c0_72, %c0_73] : memref<1x8x128xf32, #tpu.memory_space<vmem>>, vector<1x8x128xf32>
    %236 = vector.shape_cast %235 : vector<1x8x128xf32> to vector<8x128xf32>
    %237 = vector.shape_cast %234 : vector<8x128xf32> to vector<1x8x128xf32>
    tpu.vector_store %arg15[%c0_71, %c0_72, %c0_73], %237 {strides = array<i32>} : memref<1x8x128xf32, #tpu.memory_space<vmem>>, vector<1x8x128xf32>,
    return
  }
  func.func @transform_0(%arg0: i32) -> (i32, i32, i32) {
    %c0_i32 = arith.constant 0 : i32
    %c0_i32_0 = arith.constant 0 : i32
    %c0_i32_1 = arith.constant 0 : i32
    return %arg0, %c0_i32, %c0_i32_0 : i32, i32, i32
  }
  func.func @transform_1(%arg0: i32) -> (i32, i32) {
    %c0_i32 = arith.constant 0 : i32
    %c0_i32_0 = arith.constant 0 : i32
    %c0_i32_1 = arith.constant 0 : i32
    return %c0_i32, %c0_i32_0 : i32, i32
  }
  func.func @transform_2(%arg0: i32) -> (i32, i32) {
    %c0_i32 = arith.constant 0 : i32
    %c0_i32_0 = arith.constant 0 : i32
    %c0_i32_1 = arith.constant 0 : i32
    return %c0_i32, %c0_i32_0 : i32, i32
  }
  func.func @transform_3(%arg0: i32) -> (i32, i32) {
    %c0_i32 = arith.constant 0 : i32
    %c0_i32_0 = arith.constant 0 : i32
    %c0_i32_1 = arith.constant 0 : i32
    return %c0_i32, %c0_i32_0 : i32, i32
  }
  func.func @transform_4(%arg0: i32) -> (i32, i32) {
    %c0_i32 = arith.constant 0 : i32
    %c0_i32_0 = arith.constant 0 : i32
    %c0_i32_1 = arith.constant 0 : i32
    return %c0_i32, %c0_i32_0 : i32, i32
  }
  func.func @transform_5(%arg0: i32) -> (i32, i32) {
    %c0_i32 = arith.constant 0 : i32
    %c0_i32_0 = arith.constant 0 : i32
    %c0_i32_1 = arith.constant 0 : i32
    return %c0_i32, %c0_i32_0 : i32, i32
  }
  func.func @transform_6(%arg0: i32) -> (i32, i32) {
    %c0_i32 = arith.constant 0 : i32
    %c0_i32_0 = arith.constant 0 : i32
    %c0_i32_1 = arith.constant 0 : i32
    return %c0_i32, %c0_i32_0 : i32, i32
  }
  func.func @transform_7(%arg0: i32) -> (i32, i32) {
    %c0_i32 = arith.constant 0 : i32
    %c0_i32_0 = arith.constant 0 : i32
    %c0_i32_1 = arith.constant 0 : i32
    return %c0_i32, %c0_i32_0 : i32, i32
  }
  func.func @transform_8(%arg0: i32) -> (i32, i32) {
    %c0_i32 = arith.constant 0 : i32
    %c0_i32_0 = arith.constant 0 : i32
    %c0_i32_1 = arith.constant 0 : i32
    return %c0_i32, %c0_i32_0 : i32, i32
  }
  func.func @transform_9(%arg0: i32) -> (i32, i32) {
    %c0_i32 = arith.constant 0 : i32
    %c0_i32_0 = arith.constant 0 : i32
    %c0_i32_1 = arith.constant 0 : i32
    return %c0_i32, %c0_i32_0 : i32, i32
  }
  func.func @transform_10(%arg0: i32) -> (i32, i32) {
    %c0_i32 = arith.constant 0 : i32
    %c0_i32_0 = arith.constant 0 : i32
    %c0_i32_1 = arith.constant 0 : i32
    return %c0_i32, %c0_i32_0 : i32, i32
  }
  func.func @transform_11(%arg0: i32) -> (i32, i32) {
    %c0_i32 = arith.constant 0 : i32
    %c0_i32_0 = arith.constant 0 : i32
    %c0_i32_1 = arith.constant 0 : i32
    return %c0_i32, %c0_i32_0 : i32, i32
  }
  func.func @transform_12(%arg0: i32) -> (i32, i32) {
    %c0_i32 = arith.constant 0 : i32
    %c0_i32_0 = arith.constant 0 : i32
    %c0_i32_1 = arith.constant 0 : i32
    return %c0_i32, %c0_i32_0 : i32, i32
  }
  func.func @transform_13(%arg0: i32) -> (i32, i32) {
    %c0_i32 = arith.constant 0 : i32
    %c0_i32_0 = arith.constant 0 : i32
    %c0_i32_1 = arith.constant 0 : i32
    return %c0_i32, %c0_i32_0 : i32, i32
  }
  func.func @transform_14(%arg0: i32) -> (i32, i32, i32) {
    %c0_i32 = arith.constant 0 : i32
    %c0_i32_0 = arith.constant 0 : i32
    %c0_i32_1 = arith.constant 0 : i32
    return %arg0, %c0_i32, %c0_i32_0 : i32, i32, i32
  }
}

</mosaic_0001>

<bundles_post_ra>
// kernel: tpu_custom_call.1
= control target key start
LH: loop header
LB: loop body
LE: loop exit
PB: predicated region body
PF: predicated region fallthrough
CT: control target
= control target key end

     0   :  { %s3916_s0 = inlined_call_operand.vmem [shape: f32[2,20,4], index: 0, kind: input, shape index: {}]   ;;  %s3917_s1 = inlined_call_operand.vmem [shape: f32[12,64], index: 1, kind: input, shape index: {}]   ;;  %s3918_s2 = inlined_call_operand.vmem [shape: f32[1,64], index: 2, kind: input, shape index: {}]   ;;  %s3919_s3 = inlined_call_operand.vmem [shape: f32[1,64], index: 3, kind: input, shape index: {}]   ;;  %s3920_s4 = inlined_call_operand.hbm [shape: f32[192,128], index: 4, kind: input, shape index: {}]   ;;  %s3921_s5 = inlined_call_operand.vmem [shape: f32[1,128], index: 5, kind: input, shape index: {}]   ;;  %s3922_s6 = inlined_call_operand.vmem [shape: f32[1,128], index: 6, kind: input, shape index: {}]   ;;  %s3923_s7 = inlined_call_operand.hbm [shape: f32[128,256], index: 7, kind: input, shape index: {}]   ;;  %s3924_s8 = inlined_call_operand.hbm [shape: f32[384,256], index: 8, kind: input, shape index: {}]   ;;  %s3925_s9 = inlined_call_operand.vmem [shape: f32[1,256], index: 9, kind: input, shape index: {}]   ;;  %s3926_s10 = inlined_call_operand.vmem [shape: f32[1,256], index: 10, kind: input, shape index: {}]   ;;  %s3927_s11 = inlined_call_operand.hbm [shape: f32[768,128], index: 11, kind: input, shape index: {}]   ;;  %s3928_s12 = inlined_call_operand.vmem [shape: f32[1,128], index: 12, kind: input, shape index: {}]   ;;  %s3929_s13 = inlined_call_operand.vmem [shape: f32[1,128], index: 13, kind: input, shape index: {}]   ;;  %s3930_s14 = inlined_call_operand.hbm [shape: f32[2,8,128], index: 14, kind: output, shape index: {}]  }
   0x1   :  { %3946 = sst [smem:[#allocation22_spill]] %s3923_s7 }
   0x2   :  { %3947 = sst [smem:[#allocation23_spill]] %s3929_s13 }
   0x3   :  { %3948 = sst [smem:[#allocation24_spill]] %s3930_s14 }
   0x4   :  { %19 = vsyncpa [#allocation3], 0 }
   0x5   :  { %20 = vsyncpa [#allocation6], 0 }
   0x6   :  { %21 = vsyncpa [#allocation9], 0 }
   0x7   :  { %22 = vsyncpa [#allocation4], 0 }
   0x8   :  { %24 = vsyncpa [#allocation4 + $0x1], 0  ;;  %s3396_s29 = smov 0   ;;  %s3398_s30 = smov 0  }
   0x9   :  { %s3400_s15 = smov 0   ;;  %s3402_s16 = smov 0  }
   0xa LB: > { %3949 = sst [smem:[#allocation15_spill]] %s3288_s29  ;;  %s3417_s17 = sadd.s32 4294967295, %s3300_s16   ;;  %s3300_s16 = sphi %s3402_s16, %s3982_s16   ;;  %s3296_s15 = sphi %s3400_s15, %s3987_s15   ;;  %s3292_s30 = sphi %s3398_s30, %s3986_s30   ;;  %s3288_s29 = sphi %s3396_s29, %s3985_s29  }
   0xb   : > { %3950 = sst [smem:[#allocation16_spill]] %s3296_s15  ;;  %s2646_s18 = sadd.s32 4294967294, %s3300_s16  }
   0xc   : > { %3951 = sst [smem:[#allocation17_spill]] %s3300_s16  ;;  %s3421_s19 = sadd.s32 1, %s3300_s16  }
   0xd   : > { %3952 = sst [smem:[#allocation18_spill]] %s3421_s19  ;;  %s336_s20 = sadd.s32 1, %s3296_s15 }
   0xe   : > { %s333_s21 = ssub.s32 %s3300_s16, %s3421_s19  ;;  %p346_p0 = scmp.ne.s32.totalorder %s3296_s15, %s3292_s30 }
   0xf   : > { %p334_p1 = scmp.eq.s32.totalorder %s333_s21, 0  ;;  %p347_p2 = scmp.eq.s32.totalorder %s3417_s17, 1 }
  0x10   : > { %p352_p3 = scmp.ne.s32.totalorder %s3292_s30, %s3288_s29  ;;  %p353_p4 = scmp.eq.s32.totalorder %s2646_s18, 1 }
  0x11   : > { %s3432_s22 = scalar_select %p334_p1, %s3296_s15, %s336_s20  }
  0x12   : > { %p3434_p5 = por %p347_p2, %p346_p0  ;;  %p3438_p6 = por %p353_p4, %p352_p3 }
  0x13   : > { %3953 = sst [smem:[#allocation19_spill]] %s3432_s22  ;;  %p2647_p7 = scmp.ge.s32.totalorder %s3300_s16, 1 }
  0x14   : > { %s3954_s23 = scalar_select %p3434_p5, 1, 0 }
  0x15   : > { %s3956_s24 = scalar_select %p3438_p6, 1, 0 }
  0x16   : > { %3955 = sst [smem:[#allocation20_spill]] %s3954_s23  ;;  %p360_p8 = scmp.lt.s32.totalorder %s3300_s16, 3 }
  0x17   : > { %3957 = sst [smem:[#allocation21_spill]] %s3956_s24  ;;  %p3936_p9 = scmp.eq.s32.totalorder %s3417_s17, 0 }
  0x18   : > { %p3445_p10 = pnand %p2647_p7, %p360_p8  ;;  %s3302_s26 = smov [#allocation5]  }
  0x19   : > { %s400_s27 = sshll.u32 %s3302_s26, 4  ;;  %s3303_s18 = smov [#allocation2]   ;;  %s401_s27 = int_to_ptr.vmem [resolvable:$true] %s400_s27 }
  0x1a   : > { %s3958_s25 = scalar_select %p3445_p10, 1, 0 }
  0x1b   : > { %p2940_p11 = pneg %p3445_p10  ;;  %s381_s20 = sshll.u32 %s3303_s18, 4  ;;  %s3457_s20 = int_to_ptr.vmem [resolvable:$true] %s381_s20 }
  0x1c   : > { %s3960_s7 = sld [smem:[#allocation22_spill]] }
  0x1d   : > { %p3453_p12 = pnand %p3936_p9, %p2940_p11 }
  0x1f   : > { %p3467_p0 = pneg %p3453_p12 }
  0x22   : > { %s3114_s15 = scalar_lea.hbm %s3960_s7, 4096 }
  0x23   : > { %p3115_p13 = scmp.ne.s32.totalorder %s3960_s7, %s3114_s15  ;;  %p3121_p3 = scmp.lt.u32.totalorder %s3114_s15, %s3960_s7 }
  0x25   : > { %p3117_p1 = pnand %p3467_p0, %p3115_p13 }
  0x27   : > { %p3118_p2 = pneg %p3117_p1 }
  0x29   : > { %p3123_p4 = pnand %p3121_p3, %p3118_p2 }
  0x2b   : > { %3126 = shalt.err (!%p3123_p4)
}
  0x2c   : > { %s3127_s22 = scalar_lea.vmem %s401_s27, 4096  ;;  %p3135_p9 = scmp.lt.s32.totalorder %s401_s27, %s401_s27 }
  0x2d   : > { %p3128_p7 = scmp.ne.s32.totalorder %s401_s27, %s3127_s22  ;;  %p3136_p6 = scmp.lt.s32.totalorder %s3127_s22, %s3127_s22 }
  0x2f   : > { %p3130_p8 = pnand %p3128_p7, %p3467_p0  ;;  %p3137_p5 = por %p3136_p6, %p3135_p9 }
  0x31   : > { %p3131_p11 = pneg %p3130_p8 }
  0x33   : > { %p3138_p10 = pnand %p3137_p5, %p3131_p11 }
  0x35   : > { %3141 = shalt.err (!%p3138_p10)
}
  0x36   : > { %s3943_s19 = smov 256   ;;  %s3944_s24 = smov 16  }
  0x37   : > { %2946 = dma.hbm_to_vmem [thread:$0]  (!%p3453_p12), %s3960_s7, 4096, %s401_s27, [#allocation6], %s3943_s19, %s3943_s19, %s3944_s24  }
  0x38   : > { %s3142_s16 = scalar_lea.hbm %s3920_s4, 3072 }
  0x39   : > { %p3143_p5 = scmp.ne.s32.totalorder %s3920_s4, %s3142_s16  ;;  %p3149_p10 = scmp.lt.u32.totalorder %s3142_s16, %s3920_s4 }
  0x3b   : > { %p3145_p6 = pnand %p3143_p5, %p3467_p0 }
  0x3d   : > { %p3146_p9 = pneg %p3145_p6 }
  0x3f   : > { %p3151_p13 = pnand %p3149_p10, %p3146_p9 }
  0x41   : > { %3154 = shalt.err (!%p3151_p13)
}
  0x42   : > { %s3155_s27 = scalar_lea.vmem %s3457_s20, 3072  ;;  %p3163_p4 = scmp.lt.s32.totalorder %s3457_s20, %s3457_s20 }
  0x43   : > { %p3156_p1 = scmp.ne.s32.totalorder %s3457_s20, %s3155_s27  ;;  %p3164_p7 = scmp.lt.s32.totalorder %s3155_s27, %s3155_s27 }
  0x45   : > { %p3158_p2 = pnand %p3156_p1, %p3467_p0  ;;  %p3165_p8 = por %p3164_p7, %p3163_p4 }
  0x47   : > { %p3159_p3 = pneg %p3158_p2 }
  0x49   : > { %p3166_p11 = pnand %p3165_p8, %p3159_p3 }
  0x4b   : > { %3169 = shalt.err (!%p3166_p11)
}
  0x4c   : > { %s3945_s14 = smov 128   ;;  %s3307_s13 = smov 8  }
  0x4d   : > { %2943 = dma.hbm_to_vmem [thread:$0]  (!%p3453_p12), %s3920_s4, 3072, %s3457_s20, [#allocation3], %s3945_s14, %s3945_s14, %s3307_s13  }
  0x4e   : > { %s3308_s29 = smov [#allocation7]   ;;  %s3309_s21 = smov [#allocation8]  }
  0x4f   : > { %s413_s15 = sshll.u32 %s3308_s29, 4  ;;  %s432_s18 = sshll.u32 %s3309_s21, 4  ;;  %s414_s15 = int_to_ptr.vmem [resolvable:$true] %s413_s15  ;;  %s3512_s18 = int_to_ptr.vmem [resolvable:$true] %s432_s18 }
  0x50   : > { %s3170_s19 = scalar_lea.hbm %s3924_s8, 12288 }
  0x51   : > { %p3171_p5 = scmp.ne.s32.totalorder %s3924_s8, %s3170_s19  ;;  %p3177_p10 = scmp.lt.u32.totalorder %s3170_s19, %s3924_s8 }
  0x53   : > { %p3173_p6 = pnand %p3171_p5, %p3467_p0 }
  0x55   : > { %p3174_p9 = pneg %p3173_p6 }
  0x57   : > { %p3179_p13 = pnand %p3177_p10, %p3174_p9 }
  0x59   : > { %3182 = shalt.err (!%p3179_p13)
}
  0x5a   : > { %s3183_s23 = scalar_lea.vmem %s414_s15, 12288  ;;  %p3191_p4 = scmp.lt.s32.totalorder %s414_s15, %s414_s15 }
  0x5b   : > { %p3184_p1 = scmp.ne.s32.totalorder %s414_s15, %s3183_s23  ;;  %p3192_p7 = scmp.lt.s32.totalorder %s3183_s23, %s3183_s23 }
  0x5d   : > { %p3186_p2 = pnand %p3184_p1, %p3467_p0  ;;  %p3193_p8 = por %p3192_p7, %p3191_p4 }
  0x5f   : > { %p3187_p3 = pneg %p3186_p2 }
  0x61   : > { %p3194_p11 = pnand %p3193_p8, %p3187_p3 }
  0x63   : > { %3197 = shalt.err (!%p3194_p11)
}
  0x64   : > { %s3962_s7 = smov 16   ;;  %s3963_s24 = smov 256  }
  0x65   : > { %2949 = dma.hbm_to_vmem [thread:$0]  (!%p3453_p12), %s3924_s8, 12288, %s414_s15, [#allocation6], %s3963_s24, %s3963_s24, %s3962_s7  }
  0x66   : > { %s3198_s27 = scalar_lea.hbm %s3927_s11, 12288 }
  0x67   : > { %p3199_p5 = scmp.ne.s32.totalorder %s3927_s11, %s3198_s27  ;;  %p3205_p10 = scmp.lt.u32.totalorder %s3198_s27, %s3927_s11 }
  0x69   : > { %p3201_p6 = pnand %p3199_p5, %p3467_p0 }
  0x6b   : > { %p3202_p9 = pneg %p3201_p6 }
  0x6d   : > { %p3207_p13 = pnand %p3205_p10, %p3202_p9 }
  0x6f   : > { %3210 = shalt.err (!%p3207_p13)
}
  0x70   : > { %s3211_s15 = scalar_lea.vmem %s3512_s18, 12288  ;;  %p3219_p4 = scmp.lt.s32.totalorder %s3512_s18, %s3512_s18 }
  0x71   : > { %p3212_p1 = scmp.ne.s32.totalorder %s3512_s18, %s3211_s15  ;;  %p3220_p7 = scmp.lt.s32.totalorder %s3211_s15, %s3211_s15 }
  0x73   : > { %p3214_p2 = pnand %p3212_p1, %p3467_p0  ;;  %p3221_p8 = por %p3220_p7, %p3219_p4 }
  0x75   : > { %p3215_p3 = pneg %p3214_p2 }
  0x77   : > { %p3222_p11 = pnand %p3221_p8, %p3215_p3 }
  0x79   : > { %3225 = shalt.err (!%p3222_p11)
}
  0x7a   : > { %s3964_s14 = smov 128   ;;  %p3965_p5 = scmp.ne.s32.totalorder %s3958_s25, 0 }
  0x7b   : > { %2952 = dma.hbm_to_vmem [thread:$0]  (!%p3453_p12), %s3927_s11, 12288, %s3512_s18, [#allocation9], %s3964_s14, %s3964_s14, %s3307_s13  }
  0x7c   : > { %462 = sbr.rel (%p3965_p5) target bundleno = 2224 (0x8b0), region = 76  ;;  %p3966_p0 = scmp.eq.s32.totalorder (!%p3965_p5), %s3417_s17, 0 }
  0x83   : > { %3271 = dma.done.wait (%p3966_p0), [#allocation3], 3072   ;;  %p3967_p6 = pmov %p3966_p0 }
  0x84   : > { %p3968_p9 = pmov %p3966_p0 }
  0x85   : > { %3273 = vsyncadd (%p3967_p6), [#allocation3], 4294964224 }
  0x86   : > { %3275 = dma.done.wait (%p3968_p9), [#allocation6], 16384   ;;  %p3969_p10 = pmov %p3966_p0 }
  0x87   : > { %p3970_p13 = pmov %p3966_p0 }
  0x88   : > { %3277 = vsyncadd (%p3969_p10), [#allocation6], 4294950912 }
  0x89   : > { %3279 = dma.done.wait (%p3970_p13), [#allocation9], 12288   ;;  %p3971_p12 = pmov %p3966_p0 }
  0x8a   : > { %p520_p1 = scmp.lt.s32.totalorder %s3417_s17, 1  ;;  %vm532_vm0 = vcmask 1046528   ;;  %vm547_vm1 = vcmask 1045504   ;;  %v572_v7 = vld [vmem:[%s3917_s1] sm:$0xff]  ;;  %v573_v10 = vld [vmem:[%s3917_s1 + $0x8] sm:$0xf] }
  0x8b   : > { %3281 = vsyncadd (%p3971_p12), [#allocation9], 4294955008  ;;  %v574_v13 = vpack.c.bf16 %v573_v10, %v572_v7  ;;  %s3310_s27 = smov 4   ;;  %s3311_s16 = smov 8   ;;  %vm562_vm2 = vcmask 31744   ;;  %vm566_vm3 = vcmask 64512  }
  0x8c   : > { %s521_s25 = scalar_select %p520_p1, %s3417_s17, 1  ;;  %vm575_vm4 = vcmask 97280   ;;  %v694_v35 = vld [vmem:[#allocation2] sm:$0xff]  ;;  %v695_v36 = vld [vmem:[#allocation2 + $0x8] sm:$0xff]  ;;  %v696_v37 = vld [vmem:[#allocation2 + $0x10] sm:$0xff]  ;;  %v3312_v38 = vmov 0  }
  0x8d   : > { %2920 = vmatprep.subr.msk.bf16.mxu0 %vm547_vm1, %v574_v13  ;;  %v583_v18 = vsel %vm547_vm1, %v574_v13, 0  ;;  %733 = vmatprep.subr.bf16.mxu1 %v3312_v38  ;;  %v718_v39 = vpack.c.bf16 %v695_v36, %v694_v35  ;;  %v697_v40 = vld [vmem:[#allocation2 + $0x18] sm:$0xff]  ;;  %v698_v42 = vld [vmem:[#allocation2 + $0x20] sm:$0xff]  ;;  %v699_v43 = vld [vmem:[#allocation2 + $0x28] sm:$0xff]  ;;  %vm689_vm5 = vcmask 523264   ;;  %s3313_s7 = smov 64  }
  0x8e   : > { %s2921_s28 = smul.u32 24, %s521_s25  ;;  %2807 = vmatpush3.bf16.msra.mxu0 %v583_v18  ;;  %v719_v41 = vpack.c.bf16 %v697_v40, %v696_v37  ;;  %v720_v44 = vpack.c.bf16 %v699_v43, %v698_v42  ;;  %v700_v45 = vld [vmem:[#allocation2 + $0x30] sm:$0xff]  ;;  %v701_v46 = vld [vmem:[#allocation2 + $0x38] sm:$0xff]  ;;  %v702_v48 = vld [vmem:[#allocation2 + $0x40] sm:$0xff]  ;;  %vm897_vm6 = vcmask 130048   ;;  %s3314_s13 = smov 112  }
  0x8f   : > { %734 = vmatpush1.bf16.msra.mxu1 %v718_v39  ;;  %v721_v47 = vpack.c.bf16 %v701_v46, %v700_v45  ;;  %v703_v49 = vld [vmem:[#allocation2 + $0x48] sm:$0xff]  ;;  %v704_v51 = vld [vmem:[#allocation2 + $0x50] sm:$0xff]  ;;  %v705_v52 = vld [vmem:[#allocation2 + $0x58] sm:$0xff]  ;;  %s3316_s29 = smov 80   ;;  %s3317_s19 = smov 48   ;;  %vm987_vm8 = vcmask 111616  }
  0x90   : > { %s524_s18 = scalar_lea.vmem %s3916_s0, %s2921_s28  ;;  %735 = vmatprep.subr.bf16.mxu1 %v3312_v38  ;;  %v722_v50 = vpack.c.bf16 %v703_v49, %v702_v48  ;;  %v723_v53 = vpack.c.bf16 %v705_v52, %v704_v51  ;;  %v706_v54 = vld [vmem:[#allocation2 + $0x60] sm:$0xff]  ;;  %v707_v55 = vld [vmem:[#allocation2 + $0x68] sm:$0xff]  ;;  %v708_v57 = vld [vmem:[#allocation2 + $0x70] sm:$0xff]  ;;  %s3318_s21 = smov 32   ;;  %vm985_vm9 = vcmask 113664  }
  0x91   : > { %v526_v0 = vld [vmem:[%s524_s18] sm:$0xff]  ;;  %v527_v1 = vld [vmem:[%s524_s18 + $0x8] sm:$0xff]  ;;  %v528_v2 = vld [vmem:[%s524_s18 + $0x10] sm:$0xf]  ;;  %v724_v56 = vpack.c.bf16 %v707_v55, %v706_v54  ;;  %s3315_s18 = smov 96   ;;  %s3319_s22 = smov 16  }
  0x92   : > { %v533_v3 = vrot.slane %v526_v0, 1  ;;  %v534_v4 = vrot.slane %v527_v1, 1  ;;  %v536_v5 = vrot.slane %v528_v2, 1  ;;  %v548_v6 = vrot.slane %v526_v0, 2  ;;  %v709_v58 = vld [vmem:[#allocation2 + $0x78] sm:$0xff]  ;;  %v710_v60 = vld [vmem:[#allocation2 + $0x80] sm:$0xff]  ;;  %vm3636_vm7 = vmpackc.low %vm897_vm6, %vm897_vm6 }
  0x93   : > { %v549_v8 = vrot.slane %v527_v1, 2  ;;  %v551_v9 = vrot.slane %v528_v2, 2  ;;  %736 = vmatpush1.bf16.msra.mxu1 %v719_v41  ;;  %v725_v59 = vpack.c.bf16 %v709_v58, %v708_v57  ;;  %v711_v61 = vld [vmem:[#allocation2 + $0x88] sm:$0xff]  ;;  %v712_v63 = vld [vmem:[#allocation2 + $0x90] sm:$0xff]  ;;  %v2663_v7 = vld [vmem:[%s3919_s3] ss:$0 sm:$0xff] }
  0x94   : > { %v535_v11 = vsel %vm532_vm0, %v533_v3, %v534_v4  ;;  %v537_v12 = vsel %vm532_vm0, %v534_v4, %v536_v5  ;;  %737 = vmatprep.subr.bf16.mxu1 %v3312_v38  ;;  %v726_v62 = vpack.c.bf16 %v711_v61, %v710_v60  ;;  %v715_v3 = vld [vmem:[#allocation2 + $0xa8] sm:$0xff]  ;;  %v806_v35 = vld [vmem:[#allocation5 + $0x10] sm:$0xff]  ;;  %v811_v37 = vld [vmem:[#allocation5 + $0x38] sm:$0xff]  ;;  %s3974_s25 = sld [smem:[#allocation23_spill]]  ;;  %s517_s28 = sand.u32 1, %s3292_s30  }
  0x95   : > { %v3016_v14 = vpack.i.bf16 %v537_v12, %v535_v11  ;;  %v550_v15 = vsel %vm547_vm1, %v548_v6, %v549_v8  ;;  %v552_v16 = vsel %vm547_vm1, %v549_v8, %v551_v9  ;;  %v809_v36 = vld [vmem:[#allocation5 + $0x28] sm:$0xff]  ;;  %v808_v42 = vld [vmem:[#allocation5 + $0x20] sm:$0xff]  ;;  %v810_v43 = vld [vmem:[#allocation5 + $0x30] sm:$0xff]  ;;  %s2658_s26 = sshll.u32 %s517_s28, 3  ;;  %s2533_s20 = scalar_lea.sflag [#allocation4], %s517_s28 }
  0x96   : > { %v3021_v17 = vpack.i.bf16 %v552_v16, %v550_v15  ;;  %v839_v41 = vpack.c.bf16 %v811_v37, %v809_v36  ;;  %v813_v48 = vld [vmem:[#allocation5 + $0x48] sm:$0xff]  ;;  %v815_v49 = vld [vmem:[#allocation5 + $0x58] sm:$0xff]  ;;  %v812_v57 = vld [vmem:[#allocation5 + $0x40] sm:$0xff] }
  0x97   : > { %3017 = vrot.lane.b32.xlu0 %v3016_v14, %s3310_s27  ;;  %738 = vmatpush1.bf16.msra.mxu1 %v720_v44  ;;  %v814_v58 = vld [vmem:[#allocation5 + $0x50] sm:$0xff]  ;;  %v819_v60 = vld [vmem:[#allocation5 + $0x78] sm:$0xff] }
  0x98   : > { %3022 = vrot.lane.b32.xlu1 %v3021_v17, %s3311_s16  ;;  %739 = vmatprep.subr.bf16.mxu1 %v3312_v38  ;;  %v840_v61 = vpack.c.bf16 %v814_v58, %v812_v57 }
  0x9b   : > { %542 = vrot.lane.b32.xlu0 %v536_v5, %s3310_s27  ;;  %740 = vmatpush1.bf16.msra.mxu1 %v721_v47  ;;  %v2662_v5 = vld [vmem:[%s3918_s2] ss:$0 sm:$0xff]  ;;  %s3976_s27 = sld [smem:[#allocation24_spill]] }
  0x9c   : > { %557 = vrot.lane.b32.xlu1 %v551_v9, %s3311_s16  ;;  %741 = vmatprep.subr.bf16.mxu1 %v3312_v38 }
  0x9f   : > { %742 = vmatpush1.bf16.msra.mxu1 %v722_v50 }
  0xa0   : > { %743 = vmatprep.subr.bf16.mxu1 %v3312_v38 }
  0xa3   : > { %744 = vmatpush1.bf16.msra.mxu1 %v723_v53  ;;  %v838_v53 = vpack.c.bf16 %v810_v43, %v808_v42 }
  0xa4   : > { %745 = vmatprep.subr.bf16.mxu1 %v3312_v38 }
  0xa7   : > { %746 = vmatpush1.bf16.msra.mxu1 %v724_v56  ;;  %v841_v56 = vpack.c.bf16 %v815_v49, %v813_v48 }
  0xa8   : > { %747 = vmatprep.subr.bf16.mxu1 %v3312_v38 }
  0xab   : > { %748 = vmatpush1.bf16.msra.mxu1 %v725_v59  ;;  %v817_v59 = vld [vmem:[#allocation5 + $0x68] sm:$0xff] }
  0xac   : > { %749 = vmatprep.subr.bf16.mxu1 %v3312_v38 }
  0xaf   : > { %750 = vmatpush1.bf16.msra.mxu1 %v726_v62  ;;  %v843_v62 = vpack.c.bf16 %v819_v60, %v817_v59 }
  0xb0   : > { %751 = vmatprep.subr.bf16.mxu1 %v3312_v38 }
 0x109   : > { %v3018_v19 = vpop.permute.xlu0 %3017 }
 0x10a   : > { %v3020_v20 = vunpack.i.h.bf16 %v3018_v19  ;;  %v3019_v21 = vunpack.i.l.bf16 %v3018_v19  ;;  %v3023_v22 = vpop.permute.xlu1 %3022  ;;  %v716_v19 = vld [vmem:[#allocation2 + $0xb0] sm:$0xff] }
 0x10b   : > { %v3025_v23 = vunpack.i.h.bf16 %v3023_v22  ;;  %v3024_v24 = vunpack.i.l.bf16 %v3023_v22 }
 0x10c   : > { %v563_v25 = vsel %vm562_vm2, %v526_v0, %v3019_v21  ;;  %v564_v26 = vsel %vm562_vm2, %v527_v1, %v3020_v20  ;;  %v713_v0 = vld [vmem:[#allocation2 + $0x98] sm:$0xff] }
 0x10d   : > { %v543_v27 = vpop.permute.xlu0 %542  ;;  %v567_v28 = vsel %vm566_vm3, %v563_v25, %v3024_v24  ;;  %v568_v29 = vsel %vm566_vm3, %v564_v26, %v3025_v23  ;;  %v727_v1 = vpack.c.bf16 %v713_v0, %v712_v63  ;;  %v717_v20 = vld [vmem:[#allocation2 + $0xb8] sm:$0xff]  ;;  %v816_v63 = vld [vmem:[#allocation5 + $0x60] sm:$0xff]  ;;  %v818_v0 = vld [vmem:[#allocation5 + $0x70] sm:$0xff] }
 0x10e   : > { %v565_v30 = vsel %vm562_vm2, %v528_v2, %v543_v27  ;;  %v558_v31 = vpop.permute.xlu1 %557  ;;  %v570_v32 = vpack.c.bf16 %v568_v29, %v567_v28  ;;  %v714_v2 = vld [vmem:[#allocation2 + $0xa0] sm:$0xff]  ;;  %v729_v22 = vpack.c.bf16 %v717_v20, %v716_v19  ;;  %v805_v29 = vld [vmem:[#allocation5 + $0x8] sm:$0xff] }
 0x10f   : > { %v569_v33 = vsel %vm566_vm3, %v565_v30, %v558_v31  ;;  %752 = vmatpush1.bf16.msra.mxu1 %v727_v1  ;;  %v728_v4 = vpack.c.bf16 %v715_v3, %v714_v2  ;;  %v807_v30 = vld [vmem:[#allocation5 + $0x18] sm:$0xff]  ;;  %v804_v31 = vld [vmem:[#allocation5] sm:$0xff]  ;;  %v842_v1 = vpack.c.bf16 %v818_v0, %v816_v63  ;;  %v829_v20 = vld [vmem:[#allocation5 + $0xc8] sm:$0xff] }
 0x110   : > { %v571_v34 = vpack.c.bf16 %v569_v33, %v569_v33  ;;  %2808 = vmatprep.mubr.msk.bf16.mxu0 %vm575_vm4, %v570_v32  ;;  %753 = vmatprep.subr.bf16.mxu1 %v3312_v38  ;;  %v836_v40 = vpack.c.bf16 %v806_v35, %v804_v31 }
 0x112   : > { %2809 = vmatmul.mubr.msk.bf16.vlgmr.msra.gmra.mrb[0].mxu0 %vm575_vm4, %v571_v34  ;;  %v837_v34 = vpack.c.bf16 %v807_v30, %v805_v29  ;;  %v832_v29 = vld [vmem:[#allocation5 + $0xe0] sm:$0xff]  ;;  %v834_v30 = vld [vmem:[#allocation5 + $0xf0] sm:$0xff] }
 0x113   : > { %884 = vmatprep.mubr.bf16.mxu0 %v3312_v38  ;;  %754 = vmatpush1.bf16.msra.mxu1 %v728_v4  ;;  %v850_v31 = vpack.c.bf16 %v834_v30, %v832_v29 }
 0x114   : > { %755 = vmatprep.subr.bf16.mxu1 %v3312_v38  ;;  %852 = vmatprep.subr.bf16.mxu0 %v837_v34  ;;  %v2666_v34 = vld [vmem:[%s3922_s6] ss:$0 sm:$0xff] }
 0x115   : > { %853 = vmatpush1.bf16.msra.mxu0 %v836_v40 }
 0x116   : > { %854 = vmatprep.subr.bf16.mxu0 %v839_v41 }
 0x117   : > { %756 = vmatpush1.bf16.msra.mxu1 %v729_v22 }
 0x119   : > { %855 = vmatpush1.bf16.msra.mxu0 %v838_v53 }
 0x11a   : > { %856 = vmatprep.subr.bf16.mxu0 %v841_v56 }
 0x11d   : > { %857 = vmatpush1.bf16.msra.mxu0 %v840_v61 }
 0x11e   : > { %858 = vmatprep.subr.bf16.mxu0 %v843_v62 }
 0x121   : > { %859 = vmatpush1.bf16.msra.mxu0 %v842_v1 }
 0x1e5   : > { %v2810_v6 = vpop.f32.mrb[0].mxu0 }
 0x1e6   : > { %v642_v8 = vmul.f32 %v2810_v6, %v2662_v5  ;;  %v619_v9 = vpop.f32.mrb[1].mxu0 }
 0x1e7   : > { %v640_v10 = vmul.f32 %v2662_v5, %v619_v9  ;;  %v2811_v11 = vpop.f32.mrb[2].mxu0  ;;  %v823_v9 = vld [vmem:[#allocation5 + $0x98] sm:$0xff] }
 0x1e8   : > { %v652_v12 = vadd.f32 %v2663_v7, %v642_v8  ;;  %v622_v13 = vpop.f32.mrb[3].mxu0  ;;  %v821_v8 = vld [vmem:[#allocation5 + $0x88] sm:$0xff]  ;;  %v820_v11 = vld [vmem:[#allocation5 + $0x80] sm:$0xff] }
 0x1e9   : > { %v650_v14 = vadd.f32 %v2663_v7, %v640_v10  ;;  %v641_v15 = vmul.f32 %v2662_v5, %v622_v13  ;;  %v845_v10 = vpack.c.bf16 %v823_v9, %v821_v8 }
 0x1ea   : > { %v655_v16 = vmax.f32 %v652_v12, 0.0  ;;  %v822_v12 = vld [vmem:[#allocation5 + $0x90] sm:$0xff] }
 0x1eb   : > { %v653_v17 = vmax.f32 %v650_v14, 0.0  ;;  %v651_v18 = vadd.f32 %v2663_v7, %v641_v15  ;;  %v844_v13 = vpack.c.bf16 %v822_v12, %v820_v11  ;;  %860 = vmatprep.subr.bf16.mxu0 %v845_v10  ;;  %v825_v14 = vld [vmem:[#allocation5 + $0xa8] sm:$0xff]  ;;  %v827_v15 = vld [vmem:[#allocation5 + $0xb8] sm:$0xff] }
 0x1ec   : > { %v662_v21 = vrot.slane %v655_v16, 1 }
 0x1ed   : > { %v654_v23 = vmax.f32 %v651_v18, 0.0  ;;  %v659_v25 = vrot.slane %v653_v17, 1  ;;  %861 = vmatpush1.bf16.msra.mxu0 %v844_v13  ;;  %v826_v18 = vld [vmem:[#allocation5 + $0xb0] sm:$0xff] }
 0x1ee   : > { %v669_v24 = vmax.f32 %v655_v16, %v662_v21  ;;  %v847_v16 = vpack.c.bf16 %v827_v15, %v825_v14 }
 0x1ef   : > { %v660_v26 = vrot.slane %v654_v23, 1 }
 0x1f0   : > { %v685_v39 = vrot.slane %v669_v24, 2  ;;  %862 = vmatprep.subr.bf16.mxu0 %v847_v16  ;;  %v830_v24 = vld [vmem:[#allocation5 + $0xd0] sm:$0xff] }
 0x1f1   : > { %v661_v27 = vsel %vm532_vm0, %v659_v25, %v660_v26  ;;  %v663_v28 = vsel %vm532_vm0, %v660_v26, %v662_v21  ;;  %v831_v21 = vld [vmem:[#allocation5 + $0xd8] sm:$0xff]  ;;  %v833_v26 = vld [vmem:[#allocation5 + $0xe8] sm:$0xff] }
 0x1f2   : > { %v667_v32 = vmax.f32 %v653_v17, %v661_v27  ;;  %v668_v33 = vmax.f32 %v654_v23, %v663_v28  ;;  %v824_v17 = vld [vmem:[#allocation5 + $0xa0] sm:$0xff]  ;;  %v849_v22 = vpack.c.bf16 %v831_v21, %v829_v20  ;;  %v835_v27 = vld [vmem:[#allocation5 + $0xf8] sm:$0xff] }
 0x1f3   : > { %v846_v19 = vpack.c.bf16 %v826_v18, %v824_v17  ;;  %v828_v23 = vld [vmem:[#allocation5 + $0xc0] sm:$0xff]  ;;  %v851_v28 = vpack.c.bf16 %v835_v27, %v833_v26 }
 0x1f4   : > { %v682_v44 = vrot.slane %v667_v32, 2  ;;  %v683_v45 = vrot.slane %v668_v33, 2  ;;  %v672_v46 = vrot.slane %v667_v32, 1  ;;  %v673_v47 = vrot.slane %v668_v33, 1 }
 0x1f5   : > { %863 = vmatpush1.bf16.msra.mxu0 %v846_v19  ;;  %v848_v25 = vpack.c.bf16 %v830_v24, %v828_v23 }
 0x1f6   : > { %v684_v50 = vsel %vm547_vm1, %v682_v44, %v683_v45  ;;  %v686_v51 = vsel %vm547_vm1, %v683_v45, %v685_v39  ;;  %v674_v52 = vsel %vm532_vm0, %v672_v46, %v673_v47  ;;  %864 = vmatprep.subr.bf16.mxu0 %v849_v22 }
 0x1f7   : > { %v693_v54 = vpack.c.bf16 %v686_v51, %v684_v50  ;;  %v3026_v55 = vpack.i.bf16 %v673_v47, %v674_v52 }
 0x1f9   : > { %2664 = vmatprep.mubr.msk.bf16.mxu1 %vm689_vm5, %v693_v54  ;;  %3027 = vrot.lane.b32.xlu0 %v3026_v55, %s3313_s7 }
 0x1fa   : > { %865 = vmatpush1.bf16.msra.mxu0 %v848_v25 }
 0x1fb   : > { %866 = vmatprep.subr.bf16.mxu0 %v851_v28 }
 0x1fe   : > { %867 = vmatpush1.bf16.msra.mxu0 %v850_v31 }
 0x26b   : > { %v3028_v2 = vpop.permute.xlu0 %3027 }
 0x26c   : > { %v3030_v3 = vunpack.i.h.bf16 %v3028_v2  ;;  %v3029_v4 = vunpack.i.l.bf16 %v3028_v2 }
 0x26e   : > { %v690_v5 = vsel %vm689_vm5, %v667_v32, %v3029_v4  ;;  %v691_v6 = vsel %vm689_vm5, %v668_v33, %v3030_v3  ;;  %v2665_v32 = vld [vmem:[%s3921_s5] ss:$0 sm:$0xff] }
 0x26f   : > { %v692_v7 = vpack.c.bf16 %v691_v6, %v690_v5 }
 0x271   : > { %766 = vmatmul.mubr.bf16.vlgmr.msra.gmra.mrb[0].mxu1 %v692_v7 }
 0x344   : > { %v767_v33 = vpop.f32.mrb[0].mxu1 }
 0x345   : > { %v781_v35 = vmul.f32 %v2665_v32, %v767_v33  ;;  %v769_v36 = vpop.f32.mrb[1].mxu1 }
 0x346   : > { %v770_v37 = vpop.f32.mrb[2].mxu1 }
 0x347   : > { %v790_v39 = vadd.f32 %v2666_v34, %v781_v35  ;;  %v782_v40 = vmul.f32 %v2665_v32, %v770_v37  ;;  %v772_v41 = vpop.f32.mrb[3].mxu1 }
 0x349   : > { %v792_v42 = vmax.f32 %v790_v39, 0.0  ;;  %v791_v43 = vadd.f32 %v2666_v34, %v782_v40 }
 0x34b   : > { %v793_v44 = vmax.f32 %v791_v43, 0.0  ;;  %v796_v45 = vrot.slane %v792_v42, 1 }
 0x34d   : > { %v797_v46 = vrot.slane %v793_v44, 1 }
 0x34f   : > { %v798_v47 = vsel %vm532_vm0, %v796_v45, %v797_v46  ;;  %v3627_v48 = vmax.f32 %v793_v44, %v797_v46 }
 0x350   : > { %v3629_v49 = vmax.f32 %v792_v42, %v798_v47 }
 0x352   : > { %v803_v50 = vpack.c.bf16 %v3627_v48, %v3629_v49 }
 0x354   : > { %885 = vmatmul.mubr.bf16.vlgmr.msra.gmra.mrb[4].mxu0 %v803_v50 }
 0x427   : > { %v886_v51 = vpop.f32.mrb[4].mxu0 }
 0x428   : > { %v888_v52 = vpop.f32.mrb[5].mxu0  ;;  %v895_v54 = vmul.f32 0.25, %v886_v51 }
 0x429   : > { %1022 = vrot.lane.b32.xlu0 %v888_v52, %s3314_s13  ;;  %v890_v53 = vpop.f32.mrb[6].mxu0  ;;  %2816 = vmatprep.mubr.msk.f32.mxu0 %vm897_vm6, %v888_v52 }
 0x42a   : > { %v896_v55 = vmul.f32 0.25, %v890_v53  ;;  %v892_v56 = vpop.f32.mrb[7].mxu0 }
 0x42b   : > { %1024 = vrot.lane.b32.xlu1 %v892_v56, %s3314_s13 }
 0x42c   : > { %v3036_v58 = vpack.i.bf16 %v896_v55, %v895_v54  ;;  %v2868_v59 = vpack.c.bf16 %v896_v55, %v895_v54 }
 0x42e   : > { %3037 = vrot.lane.b32.xlu0 %v3036_v58, %s3315_s18  ;;  %2870 = vmatprep.subr.msk.bf16.mxu0 %vm3636_vm7, %v2868_v59 }
 0x42f   : > { %2873 = vmatpush3.bf16.xpose.msk.msra.mxu0 %vm3636_vm7, %v2868_v59  ;;  %3032 = vrot.lane.b32.xlu1 %v3036_v58, %s3314_s13  ;;  %s3975_s13 = sld [smem:[#allocation20_spill]] }
 0x432   : > { %1274 = vrot.lane.b32.xlu0 %v888_v52, %s3316_s29 }
 0x433   : > { %1148 = vrot.lane.b32.xlu1 %v888_v52, %s3315_s18 }
 0x435   : > { %p3977_p3 = scmp.ne.s32.totalorder %s3975_s13, 0 }
 0x436   : > { %3047 = vrot.lane.b32.xlu0 %v3036_v58, %s3313_s7  ;;  %2817 = vmatmul.mubr.msk.f32.vlgmr.msra.gmra.mrb[8].mxu0 %vm897_vm6, %v892_v56 }
 0x437   : > { %3042 = vrot.lane.b32.xlu1 %v3036_v58, %s3316_s29 }
 0x43a   : > { %3052 = vrot.lane.b32.xlu0 %v3036_v58, %s3317_s19 }
 0x43b   : > { %1150 = vrot.lane.b32.xlu1 %v892_v56, %s3315_s18  ;;  %s2702_s18 = sshll.u32 %s3417_s17, 7  ;;  %s3320_s17 = smov [#allocation10]  }
 0x43c   : > { %s3874_s16 = scalar_lea.hbm %s3976_s27, %s2702_s18  ;;  %s3230_s15 = sshll.u32 %s3320_s17, 4  ;;  %s3231_s15 = int_to_ptr.vmem [resolvable:$false] %s3230_s15 }
 0x43d   : > { %s3232_s14 = scalar_lea.vmem %s3231_s15, 256 }
 0x43e   : > { %3057 = vrot.lane.b32.xlu0 %v3036_v58, %s3318_s21 }
 0x43f   : > { %1276 = vrot.lane.b32.xlu1 %v892_v56, %s3316_s29  ;;  %s519_s29 = scalar_lea.vmem [#allocation10], %s2658_s26 }
 0x442   : > { %3062 = vrot.lane.b32.xlu0 %v3036_v58, %s3319_s22 }
 0x443   : > { %1400 = vrot.lane.b32.xlu1 %v888_v52, %s3313_s7 }
 0x446   : > { %1526 = vrot.lane.b32.xlu0 %v888_v52, %s3317_s19 }
 0x447   : > { %1402 = vrot.lane.b32.xlu1 %v892_v56, %s3313_s7 }
 0x44a   : > { %1652 = vrot.lane.b32.xlu0 %v888_v52, %s3318_s21 }
 0x44b   : > { %1528 = vrot.lane.b32.xlu1 %v892_v56, %s3317_s19  ;;  %s2546_s19 = sshll.u32 %s519_s29, 4  ;;  %s3876_s19 = int_to_ptr.vmem [resolvable:$true] %s2546_s19 }
 0x44c   : > { %s3226_s23 = scalar_lea.vmem %s3876_s19, 128  ;;  %p3233_p8 = scmp.lt.s32.totalorder %s3876_s19, %s3231_s15 }
 0x44d   : > { %p3227_p2 = scmp.ne.s32.totalorder %s3876_s19, %s3226_s23  ;;  %p3234_p11 = scmp.lt.s32.totalorder %s3232_s14, %s3226_s23 }
 0x44e   : > { %1778 = vrot.lane.b32.xlu0 %v888_v52, %s3319_s22 }
 0x44f   : > { %1654 = vrot.lane.b32.xlu1 %v892_v56, %s3318_s21  ;;  %p3228_p4 = pnand %p3227_p2, %p3977_p3  ;;  %p3235_p5 = por %p3234_p11, %p3233_p8 }
 0x451   : > { %p3229_p7 = pneg %p3228_p4 }
 0x453   : > { %1780 = vrot.lane.b32.xlu1 %v892_v56, %s3319_s22  ;;  %p3236_p0 = pnand %p3235_p5, %p3229_p7 }
 0x49b   : > { %v1023_v60 = vpop.permute.xlu0 %1022 }
 0x49c   : > { %2823 = vmatprep.mubr.msk.f32.mxu0 %vm897_vm6, %v1023_v60 }
 0x49d   : > { %v1025_v61 = vpop.permute.xlu1 %1024 }
 0x4a0   : > { %v3038_v62 = vpop.permute.xlu0 %3037 }
 0x4a1   : > { %v3040_v63 = vunpack.i.h.bf16 %v3038_v62  ;;  %v3039_v0 = vunpack.i.l.bf16 %v3038_v62  ;;  %v3033_v1 = vpop.permute.xlu1 %3032 }
 0x4a2   : > { %v3035_v2 = vunpack.i.h.bf16 %v3033_v1  ;;  %v3034_v3 = vunpack.i.l.bf16 %v3033_v1 }
 0x4a3   : > { %v2880_v4 = vpack.c.bf16 %v3040_v63, %v3039_v0 }
 0x4a4   : > { %v2874_v5 = vpack.c.bf16 %v3035_v2, %v3034_v3  ;;  %v1275_v6 = vpop.permute.xlu0 %1274 }
 0x4a5   : > { %2882 = vmatprep.subr.msk.bf16.mxu1 %vm3636_vm7, %v2880_v4  ;;  %v1149_v7 = vpop.permute.xlu1 %1148 }
 0x4a6   : > { %2876 = vmatprep.subr.msk.bf16.mxu0 %vm3636_vm7, %v2874_v5  ;;  %2885 = vmatpush3.bf16.xpose.msk.msra.mxu1 %vm3636_vm7, %v2880_v4 }
 0x4a7   : > { %2830 = vmatprep.mubr.msk.f32.mxu1 %vm897_vm6, %v1149_v7  ;;  %2879 = vmatpush3.bf16.xpose.msk.msra.mxu0 %vm3636_vm7, %v2874_v5 }
 0x4a8   : > { %v3048_v8 = vpop.permute.xlu0 %3047 }
 0x4a9   : > { %v3050_v9 = vunpack.i.h.bf16 %v3048_v8  ;;  %v3049_v10 = vunpack.i.l.bf16 %v3048_v8  ;;  %v3043_v11 = vpop.permute.xlu1 %3042  ;;  %v1924_v8 = vld [vmem:[#allocation7 + $0x8] sm:$0xff] }
 0x4aa   : > { %v3045_v12 = vunpack.i.h.bf16 %v3043_v11  ;;  %v3044_v13 = vunpack.i.l.bf16 %v3043_v11 }
 0x4ab   : > { %v2892_v14 = vpack.c.bf16 %v3050_v9, %v3049_v10  ;;  %v1926_v9 = vld [vmem:[#allocation7 + $0x18] sm:$0xff]  ;;  %v1923_v10 = vld [vmem:[#allocation7] sm:$0xff] }
 0x4ac   : > { %v2886_v15 = vpack.c.bf16 %v3045_v12, %v3044_v13  ;;  %v3053_v16 = vpop.permute.xlu0 %3052  ;;  %v2020_v11 = vpack.c.bf16 %v1926_v9, %v1924_v8  ;;  %v1925_v12 = vld [vmem:[#allocation7 + $0x10] sm:$0xff]  ;;  %v1928_v13 = vld [vmem:[#allocation7 + $0x28] sm:$0xff] }
 0x4ad   : > { %v3055_v17 = vunpack.i.h.bf16 %v3053_v16  ;;  %v3054_v18 = vunpack.i.l.bf16 %v3053_v16  ;;  %2894 = vmatprep.subr.msk.bf16.mxu1 %vm3636_vm7, %v2892_v14  ;;  %v1151_v19 = vpop.permute.xlu1 %1150 }
 0x4ae   : > { %2824 = vmatmul.mubr.msk.f32.vlgmr.msra.gmra.mrb[10].mxu0 %vm897_vm6, %v1025_v61  ;;  %2831 = vmatmul.mubr.msk.f32.vlgmr.msra.gmra.mrb[4].mxu1 %vm897_vm6, %v1151_v19  ;;  %v1932_v19 = vld [vmem:[#allocation7 + $0x48] sm:$0xff] }
 0x4af   : > { %v2898_v20 = vpack.c.bf16 %v3055_v17, %v3054_v18  ;;  %2888 = vmatprep.subr.msk.bf16.mxu0 %vm3636_vm7, %v2886_v15  ;;  %2897 = vmatpush3.bf16.xpose.msk.msra.mxu1 %vm3636_vm7, %v2892_v14  ;;  %v1930_v14 = vld [vmem:[#allocation7 + $0x38] sm:$0xff]  ;;  %v1927_v17 = vld [vmem:[#allocation7 + $0x20] sm:$0xff]  ;;  %v1929_v18 = vld [vmem:[#allocation7 + $0x30] sm:$0xff] }
 0x4b0   : > { %2891 = vmatpush3.bf16.xpose.msk.msra.mxu0 %vm3636_vm7, %v2886_v15  ;;  %2837 = vmatprep.mubr.msk.f32.mxu0 %vm897_vm6, %v1275_v6  ;;  %v3058_v21 = vpop.permute.xlu0 %3057  ;;  %v2019_v15 = vpack.c.bf16 %v1925_v12, %v1923_v10  ;;  %v2022_v16 = vpack.c.bf16 %v1930_v14, %v1928_v13 }
 0x4b1   : > { %v3060_v22 = vunpack.i.h.bf16 %v3058_v21  ;;  %v3059_v23 = vunpack.i.l.bf16 %v3058_v21  ;;  %v1277_v24 = vpop.permute.xlu1 %1276  ;;  %2900 = vmatprep.subr.msk.bf16.mxu0 %vm3636_vm7, %v2898_v20  ;;  %v2021_v21 = vpack.c.bf16 %v1929_v18, %v1927_v17 }
 0x4b3   : > { %v2904_v25 = vpack.c.bf16 %v3060_v22, %v3059_v23  ;;  %v1931_v23 = vld [vmem:[#allocation7 + $0x40] sm:$0xff] }
 0x4b4   : > { %v3063_v26 = vpop.permute.xlu0 %3062 }
 0x4b5   : > { %v3065_v27 = vunpack.i.h.bf16 %v3063_v26  ;;  %v3064_v28 = vunpack.i.l.bf16 %v3063_v26  ;;  %2906 = vmatprep.subr.msk.bf16.mxu1 %vm3636_vm7, %v2904_v25  ;;  %v1401_v29 = vpop.permute.xlu1 %1400  ;;  %v1938_v26 = vld [vmem:[#allocation7 + $0x78] sm:$0xff] }
 0x4b6   : > { %2844 = vmatprep.mubr.msk.f32.mxu1 %vm897_vm6, %v1401_v29  ;;  %v1935_v29 = vld [vmem:[#allocation7 + $0x60] sm:$0xff] }
 0x4b7   : > { %v2910_v30 = vpack.c.bf16 %v3065_v27, %v3064_v28  ;;  %2838 = vmatmul.mubr.msk.f32.vlgmr.msra.gmra.mrb[12].mxu0 %vm897_vm6, %v1277_v24  ;;  %v1933_v24 = vld [vmem:[#allocation7 + $0x50] sm:$0xff] }
 0x4b8   : > { %2903 = vmatpush3.bf16.xpose.msk.msra.mxu0 %vm3636_vm7, %v2898_v20  ;;  %v1527_v31 = vpop.permute.xlu0 %1526  ;;  %v1934_v20 = vld [vmem:[#allocation7 + $0x58] sm:$0xff]  ;;  %v2023_v27 = vpack.c.bf16 %v1933_v24, %v1931_v23 }
 0x4b9   : > { %v1403_v32 = vpop.permute.xlu1 %1402  ;;  %2851 = vmatprep.mubr.msk.f32.mxu0 %vm897_vm6, %v1527_v31  ;;  %2912 = vmatprep.subr.msk.bf16.mxu0 %vm3636_vm7, %v2910_v30  ;;  %v2024_v22 = vpack.c.bf16 %v1934_v20, %v1932_v19  ;;  %v1940_v31 = vld [vmem:[#allocation7 + $0x88] sm:$0xff] }
 0x4ba   : > { %2845 = vmatmul.mubr.msk.f32.vlgmr.msra.gmra.mrb[6].mxu1 %vm897_vm6, %v1403_v32  ;;  %v1942_v32 = vld [vmem:[#allocation7 + $0x98] sm:$0xff] }
 0x4bb   : > { %2909 = vmatpush3.bf16.xpose.msk.msra.mxu1 %vm3636_vm7, %v2904_v25  ;;  %v1936_v25 = vld [vmem:[#allocation7 + $0x68] sm:$0xff] }
 0x4bc   : > { %v1653_v33 = vpop.permute.xlu0 %1652  ;;  %2067 = vmatprep.subr.bf16.mxu1 %v2020_v11  ;;  %v2026_v28 = vpack.c.bf16 %v1938_v26, %v1936_v25 }
 0x4bd   : > { %2858 = vmatprep.mubr.msk.f32.mxu1 %vm897_vm6, %v1653_v33  ;;  %v1529_v34 = vpop.permute.xlu1 %1528 }
 0x4bf   : > { %2852 = vmatmul.mubr.msk.f32.vlgmr.msra.gmra.mrb[14].mxu0 %vm897_vm6, %v1529_v34  ;;  %v2028_v34 = vpack.c.bf16 %v1942_v32, %v1940_v31 }
 0x4c0   : > { %2915 = vmatpush3.bf16.xpose.msk.msra.mxu0 %vm3636_vm7, %v2910_v30  ;;  %v1779_v35 = vpop.permute.xlu0 %1778  ;;  %v1937_v30 = vld [vmem:[#allocation7 + $0x70] sm:$0xff] }
 0x4c1   : > { %v1655_v36 = vpop.permute.xlu1 %1654  ;;  %2865 = vmatprep.mubr.msk.f32.mxu0 %vm897_vm6, %v1779_v35  ;;  %v2025_v33 = vpack.c.bf16 %v1937_v30, %v1935_v29  ;;  %v1939_v35 = vld [vmem:[#allocation7 + $0x80] sm:$0xff] }
 0x4c2   : > { %2859 = vmatmul.mubr.msk.f32.vlgmr.msra.gmra.mrb[8].mxu1 %vm897_vm6, %v1655_v36  ;;  %v1941_v36 = vld [vmem:[#allocation7 + $0x90] sm:$0xff] }
 0x4c3   : > { %2068 = vmatpush1.bf16.msra.mxu1 %v2019_v15 }
 0x4c4   : > { %2069 = vmatprep.subr.bf16.mxu1 %v2022_v16 }
 0x4c5   : > { %v1781_v37 = vpop.permute.xlu1 %1780 }
 0x4c7   : > { %2866 = vmatmul.mubr.msk.f32.vlgmr.msra.gmra.mrb[16].mxu0 %vm897_vm6, %v1781_v37  ;;  %2070 = vmatpush1.bf16.msra.mxu1 %v2021_v21  ;;  %v1944_v37 = vld [vmem:[#allocation7 + $0xa8] sm:$0xff] }
 0x4c8   : > { %2071 = vmatprep.subr.bf16.mxu1 %v2024_v22 }
 0x4cb   : > { %2072 = vmatpush1.bf16.msra.mxu1 %v2023_v27 }
 0x4cc   : > { %2073 = vmatprep.subr.bf16.mxu1 %v2026_v28 }
 0x4cf   : > { %2074 = vmatpush1.bf16.msra.mxu1 %v2025_v33 }
 0x4d0   : > { %2075 = vmatprep.subr.bf16.mxu1 %v2028_v34 }
 0x509   : > { %v2818_v39 = vpop.f32.mrb[8].mxu0 }
 0x50a   : > { %v988_v40 = vsel %vm987_vm8, %v2818_v39, -inf  ;;  %v976_v41 = vpop.f32.mrb[9].mxu0 }
 0x50b   : > { %v986_v42 = vsel %vm985_vm9, %v976_v41, -inf }
 0x50c   : > { %v989_v43 = vmax.f32 %v986_v42, %v988_v40  ;;  %v2027_v40 = vpack.c.bf16 %v1941_v36, %v1939_v35  ;;  %v1943_v42 = vld [vmem:[#allocation7 + $0xa0] sm:$0xff] }
 0x50e   : > { %v990_v44 = vrot.slane %v989_v43, 4  ;;  %2076 = vmatpush1.bf16.msra.mxu1 %v2027_v40 }
 0x510   : > { %v991_v45 = vmax.f32 %v989_v43, %v990_v44  ;;  %v1945_v43 = vld [vmem:[#allocation7 + $0xb0] sm:$0xff]  ;;  %v1948_v44 = vld [vmem:[#allocation7 + $0xc8] sm:$0xff] }
 0x512   : > { %v992_v46 = vrot.slane %v991_v45, 2 }
 0x514   : > { %v993_v47 = vmax.f32 %v991_v45, %v992_v46  ;;  %v1950_v45 = vld [vmem:[#allocation7 + $0xd8] sm:$0xff]  ;;  %v2029_v46 = vpack.c.bf16 %v1945_v43, %v1943_v42 }
 0x516   : > { %v994_v50 = vrot.slane %v993_v47, 1 }
 0x518   : > { %v995_v51 = vmax.f32 %v993_v47, %v994_v50  ;;  %v2032_v47 = vpack.c.bf16 %v1950_v45, %v1948_v44 }
 0x51a   : > { %v996_v52 = vsub.f32 %v976_v41, %v995_v51  ;;  %v997_v53 = vsub.f32 %v2818_v39, %v995_v51  ;;  %v1946_v39 = vld [vmem:[#allocation7 + $0xb8] sm:$0xff] }
 0x51b   : > { %v2030_v41 = vpack.c.bf16 %v1946_v39, %v1944_v37 }
 0x51c   : > { %v998_v54 = vmul.f32 1.442695, %v996_v52  ;;  %v1000_v55 = vmul.f32 1.442695, %v997_v53 }
 0x51d   : > { %2077 = vmatprep.subr.bf16.mxu1 %v2030_v41 }
 0x51e   : > { %3066 = vpow2.f32 %v998_v54  ;;  %2078 = vmatpush1.bf16.msra.mxu1 %v2029_v46 }
 0x51f   : > { %3068 = vpow2.f32 %v1000_v55  ;;  %2079 = vmatprep.subr.bf16.mxu1 %v2032_v47 }
 0x528   : > { %v3067_v56 = vpop.eup %3066 }
 0x529   : > { %v3069_v57 = vpop.eup %3068  ;;  %v1002_v58 = vsel %vm985_vm9, %v3067_v56, 0.0 }
 0x52a   : > { %v1003_v59 = vsel %vm987_vm8, %v3069_v57, 0.0 }
 0x52b   : > { %v1004_v60 = vadd.f32 %v1003_v59, %v1002_v58 }
 0x52d   : > { %v1005_v61 = vrot.slane %v1004_v60, 4 }
 0x52f   : > { %v1006_v62 = vadd.f32 %v1005_v61, %v1004_v60 }
 0x531   : > { %v1007_v63 = vrot.slane %v1006_v62, 2 }
 0x533   : > { %v1008_v0 = vadd.f32 %v1007_v63, %v1006_v62 }
 0x535   : > { %v1009_v1 = vrot.slane %v1008_v0, 1 }
 0x537   : > { %v1010_v2 = vadd.f32 %v1009_v1, %v1008_v0 }
 0x539   : > { %3070 = vrcp.f32 %v1010_v2 }
 0x543   : > { %v3071_v3 = vpop.eup %3070 }
 0x544   : > { %v1013_v4 = vmul.f32 %v3071_v3, %v3069_v57  ;;  %v1012_v5 = vmul.f32 %v3071_v3, %v3067_v56 }
 0x546   : > { %v1017_v6 = vsel %vm987_vm8, %v1013_v4, 0.0  ;;  %v1014_v7 = vsel %vm985_vm9, %v1012_v5, 0.0 }
 0x547   : > { %1018 = vadd.xlane.f32.xlu1 %v1017_v6  ;;  %1015 = vadd.xlane.f32.xlu0 %v1014_v7 }
 0x581   : > { %v2825_v50 = vpop.f32.mrb[10].mxu0  ;;  %v2832_v51 = vpop.f32.mrb[4].mxu1 }
 0x582   : > { %v1114_v52 = vsel %vm987_vm8, %v2825_v50, -inf  ;;  %v1240_v53 = vsel %vm987_vm8, %v2832_v51, -inf  ;;  %v1104_v54 = vpop.f32.mrb[11].mxu0  ;;  %v1230_v55 = vpop.f32.mrb[5].mxu1 }
 0x583   : > { %v1113_v56 = vsel %vm985_vm9, %v1104_v54, -inf  ;;  %v1239_v57 = vsel %vm985_vm9, %v1230_v55, -inf }
 0x584   : > { %v1115_v58 = vmax.f32 %v1113_v56, %v1114_v52  ;;  %v1241_v59 = vmax.f32 %v1239_v57, %v1240_v53 }
 0x586   : > { %v1116_v60 = vrot.slane %v1115_v58, 4  ;;  %v1242_v61 = vrot.slane %v1241_v59, 4 }
 0x588   : > { %v1117_v62 = vmax.f32 %v1115_v58, %v1116_v60  ;;  %v1243_v63 = vmax.f32 %v1241_v59, %v1242_v61 }
 0x58a   : > { %v1118_v0 = vrot.slane %v1117_v62, 2  ;;  %v1244_v1 = vrot.slane %v1243_v63, 2  ;;  %v2839_v2 = vpop.f32.mrb[12].mxu0 }
 0x58b   : > { %v1366_v3 = vsel %vm987_vm8, %v2839_v2, -inf  ;;  %v1356_v4 = vpop.f32.mrb[13].mxu0 }
 0x58c   : > { %v1119_v5 = vmax.f32 %v1117_v62, %v1118_v0  ;;  %v1245_v6 = vmax.f32 %v1243_v63, %v1244_v1  ;;  %v1365_v7 = vsel %vm985_vm9, %v1356_v4, -inf }
 0x58d   : > { %v1367_v8 = vmax.f32 %v1365_v7, %v1366_v3  ;;  %v3702_v9 = vpop.f32.mrb[6].mxu1 }
 0x58e   : > { %v1120_v10 = vrot.slane %v1119_v5, 1  ;;  %v1246_v11 = vrot.slane %v1245_v6, 1  ;;  %v1492_v12 = vsel %vm987_vm8, %v3702_v9, -inf  ;;  %v3706_v13 = vpop.f32.mrb[7].mxu1 }
 0x58f   : > { %v1368_v14 = vrot.slane %v1367_v8, 4  ;;  %v1491_v15 = vsel %vm985_vm9, %v3706_v13, -inf }
 0x590   : > { %v1121_v16 = vmax.f32 %v1119_v5, %v1120_v10  ;;  %v1247_v17 = vmax.f32 %v1245_v6, %v1246_v11  ;;  %v1493_v18 = vmax.f32 %v1491_v15, %v1492_v12 }
 0x591   : > { %v1369_v19 = vmax.f32 %v1367_v8, %v1368_v14 }
 0x592   : > { %v1122_v20 = vsub.f32 %v1104_v54, %v1121_v16  ;;  %v1123_v21 = vsub.f32 %v2825_v50, %v1121_v16  ;;  %v1248_v22 = vsub.f32 %v1230_v55, %v1247_v17  ;;  %v1249_v23 = vsub.f32 %v2832_v51, %v1247_v17  ;;  %v3710_v24 = vpop.f32.mrb[14].mxu0 }
 0x593   : > { %v1370_v25 = vrot.slane %v1369_v19, 2  ;;  %v1494_v26 = vrot.slane %v1493_v18, 4  ;;  %v1618_v27 = vsel %vm987_vm8, %v3710_v24, -inf  ;;  %v3714_v28 = vpop.f32.mrb[15].mxu0 }
 0x594   : > { %v1124_v29 = vmul.f32 1.442695, %v1122_v20  ;;  %v1126_v30 = vmul.f32 1.442695, %v1123_v21  ;;  %v1250_v31 = vmul.f32 1.442695, %v1248_v22 }
 0x595   : > { %v1252_v32 = vmul.f32 1.442695, %v1249_v23  ;;  %v1371_v33 = vmax.f32 %v1369_v19, %v1370_v25  ;;  %v1495_v34 = vmax.f32 %v1493_v18, %v1494_v26  ;;  %v1617_v35 = vsel %vm985_vm9, %v3714_v28, -inf  ;;  %v3718_v36 = vpop.f32.mrb[8].mxu1 }
 0x596   : > { %3072 = vpow2.f32 %v1124_v29  ;;  %v1619_v37 = vmax.f32 %v1617_v35, %v1618_v27  ;;  %v1744_v39 = vsel %vm987_vm8, %v3718_v36, -inf  ;;  %v3722_v40 = vpop.f32.mrb[9].mxu1 }
 0x597   : > { %3074 = vpow2.f32 %v1126_v30  ;;  %v1372_v41 = vrot.slane %v1371_v33, 1  ;;  %v1496_v42 = vrot.slane %v1495_v34, 2  ;;  %v1743_v43 = vsel %vm985_vm9, %v3722_v40, -inf }
 0x598   : > { %3076 = vpow2.f32 %v1250_v31  ;;  %v1620_v44 = vrot.slane %v1619_v37, 4  ;;  %v1745_v45 = vmax.f32 %v1743_v43, %v1744_v39 }
 0x599   : > { %3078 = vpow2.f32 %v1252_v32  ;;  %v1373_v46 = vmax.f32 %v1371_v33, %v1372_v41  ;;  %v1497_v47 = vmax.f32 %v1495_v34, %v1496_v42 }
 0x59a   : > { %v1621_v50 = vmax.f32 %v1619_v37, %v1620_v44  ;;  %v1746_v51 = vrot.slane %v1745_v45, 4  ;;  %v3726_v52 = vpop.f32.mrb[16].mxu0 }
 0x59b   : > { %v1374_v53 = vsub.f32 %v1356_v4, %v1373_v46  ;;  %v1375_v54 = vsub.f32 %v2839_v2, %v1373_v46  ;;  %v1498_v55 = vrot.slane %v1497_v47, 1  ;;  %v1870_v56 = vsel %vm987_vm8, %v3726_v52, -inf  ;;  %v3730_v57 = vpop.f32.mrb[17].mxu0 }
 0x59c   : > { %v1622_v58 = vrot.slane %v1621_v50, 2  ;;  %v1747_v59 = vmax.f32 %v1745_v45, %v1746_v51  ;;  %v1869_v60 = vsel %vm985_vm9, %v3730_v57, -inf }
 0x59d   : > { %v1376_v61 = vmul.f32 1.442695, %v1374_v53  ;;  %v1378_v62 = vmul.f32 1.442695, %v1375_v54  ;;  %v1499_v63 = vmax.f32 %v1497_v47, %v1498_v55  ;;  %v1871_v0 = vmax.f32 %v1869_v60, %v1870_v56 }
 0x59e   : > { %v1623_v1 = vmax.f32 %v1621_v50, %v1622_v58  ;;  %v1748_v3 = vrot.slane %v1747_v59, 2 }
 0x59f   : > { %3080 = vpow2.f32 %v1376_v61  ;;  %v1500_v2 = vsub.f32 %v3706_v13, %v1499_v63  ;;  %v1501_v4 = vsub.f32 %v3702_v9, %v1499_v63  ;;  %v1872_v5 = vrot.slane %v1871_v0, 4 }
 0x5a0   : > { %v3736_v6 = vpop.eup %3072  ;;  %3082 = vpow2.f32 %v1378_v62  ;;  %v1624_v7 = vrot.slane %v1623_v1, 1  ;;  %v1749_v8 = vmax.f32 %v1747_v59, %v1748_v3 }
 0x5a1   : > { %v3738_v10 = vpop.eup %3074  ;;  %v1128_v11 = vsel %vm985_vm9, %v3736_v6, 0.0  ;;  %v1502_v12 = vmul.f32 1.442695, %v1500_v2  ;;  %v1504_v14 = vmul.f32 1.442695, %v1501_v4  ;;  %v1873_v15 = vmax.f32 %v1871_v0, %v1872_v5 }
 0x5a2   : > { %v3742_v16 = vpop.eup %3076  ;;  %v1129_v13 = vsel %vm987_vm8, %v3738_v10, 0.0  ;;  %v1625_v9 = vmax.f32 %v1623_v1, %v1624_v7  ;;  %v1750_v17 = vrot.slane %v1749_v8, 1 }
 0x5a3   : > { %v3746_v18 = vpop.eup %3078  ;;  %v1130_v19 = vadd.f32 %v1129_v13, %v1128_v11  ;;  %v1254_v20 = vsel %vm985_vm9, %v3742_v16, 0.0  ;;  %3084 = vpow2.f32 %v1502_v12  ;;  %v1874_v21 = vrot.slane %v1873_v15, 2 }
 0x5a4   : > { %v1255_v22 = vsel %vm987_vm8, %v3746_v18, 0.0  ;;  %3086 = vpow2.f32 %v1504_v14  ;;  %v1626_v23 = vsub.f32 %v3714_v28, %v1625_v9  ;;  %v1627_v25 = vsub.f32 %v3710_v24, %v1625_v9 }
 0x5a5   : > { %v1131_v26 = vrot.slane %v1130_v19, 4  ;;  %v1256_v27 = vadd.f32 %v1255_v22, %v1254_v20  ;;  %v1751_v29 = vmax.f32 %v1749_v8, %v1750_v17  ;;  %v1875_v30 = vmax.f32 %v1873_v15, %v1874_v21 }
 0x5a6   : > { %v1628_v31 = vmul.f32 1.442695, %v1626_v23  ;;  %v1630_v32 = vmul.f32 1.442695, %v1627_v25 }
 0x5a7   : > { %v1132_v33 = vadd.f32 %v1131_v26, %v1130_v19  ;;  %v1257_v34 = vrot.slane %v1256_v27, 4  ;;  %v1752_v35 = vsub.f32 %v3722_v40, %v1751_v29  ;;  %v1753_v37 = vsub.f32 %v3718_v36, %v1751_v29 }
 0x5a8   : > { %3088 = vpow2.f32 %v1628_v31  ;;  %v1876_v39 = vrot.slane %v1875_v30, 1 }
 0x5a9   : > { %v3756_v41 = vpop.eup %3080  ;;  %v1258_v42 = vadd.f32 %v1257_v34, %v1256_v27  ;;  %3090 = vpow2.f32 %v1630_v32  ;;  %v1754_v28 = vmul.f32 1.442695, %v1752_v35  ;;  %v1756_v24 = vmul.f32 1.442695, %v1753_v37 }
 0x5aa   : > { %v3758_v43 = vpop.eup %3082  ;;  %v1380_v44 = vsel %vm985_vm9, %v3756_v41, 0.0  ;;  %v1877_v45 = vmax.f32 %v1875_v30, %v1876_v39  ;;  %v1133_v46 = vrot.slane %v1132_v33, 2 }
 0x5ab   : > { %v1381_v40 = vsel %vm987_vm8, %v3758_v43, 0.0  ;;  %3092 = vpow2.f32 %v1754_v28  ;;  %v1259_v36 = vrot.slane %v1258_v42, 2 }
 0x5ac   : > { %v1382_v47 = vadd.f32 %v1381_v40, %v1380_v44  ;;  %3094 = vpow2.f32 %v1756_v24  ;;  %v1878_v50 = vsub.f32 %v3730_v57, %v1877_v45  ;;  %v1879_v51 = vsub.f32 %v3726_v52, %v1877_v45 }
 0x5ad   : > { %v3766_v53 = vpop.eup %3084  ;;  %v1134_v54 = vadd.f32 %v1133_v46, %v1132_v33  ;;  %v1260_v55 = vadd.f32 %v1259_v36, %v1258_v42 }
 0x5ae   : > { %v3768_v56 = vpop.eup %3086  ;;  %v1383_v58 = vrot.slane %v1382_v47, 4  ;;  %v1506_v59 = vsel %vm985_vm9, %v3766_v53, 0.0  ;;  %v1880_v60 = vmul.f32 1.442695, %v1878_v50  ;;  %v1882_v61 = vmul.f32 1.442695, %v1879_v51 }
 0x5af   : > { %v1507_v62 = vsel %vm987_vm8, %v3768_v56, 0.0  ;;  %v1135_v63 = vrot.slane %v1134_v54, 1  ;;  %v1261_v0 = vrot.slane %v1260_v55, 1 }
 0x5b0   : > { %v1384_v57 = vadd.f32 %v1383_v58, %v1382_v47  ;;  %v1508_v1 = vadd.f32 %v1507_v62, %v1506_v59  ;;  %3096 = vpow2.f32 %v1880_v60 }
 0x5b1   : > { %3098 = vpow2.f32 %v1882_v61  ;;  %v1136_v52 = vadd.f32 %v1135_v63, %v1134_v54  ;;  %v1262_v3 = vadd.f32 %v1261_v0, %v1260_v55 }
 0x5b2   : > { %v3774_v2 = vpop.eup %3088  ;;  %v1509_v4 = vrot.slane %v1508_v1, 4  ;;  %v1385_v5 = vrot.slane %v1384_v57, 2 }
 0x5b3   : > { %v3776_v7 = vpop.eup %3090  ;;  %v1632_v8 = vsel %vm985_vm9, %v3774_v2, 0.0  ;;  %3100 = vrcp.f32 %v1136_v52 }
 0x5b4   : > { %v1510_v11 = vadd.f32 %v1509_v4, %v1508_v1  ;;  %v1633_v12 = vsel %vm987_vm8, %v3776_v7, 0.0  ;;  %3102 = vrcp.f32 %v1262_v3  ;;  %v1386_v14 = vadd.f32 %v1385_v5, %v1384_v57 }
 0x5b5   : > { %v3782_v15 = vpop.eup %3092  ;;  %v1634_v13 = vadd.f32 %v1633_v12, %v1632_v8  ;;  %v1947_v12 = vld [vmem:[#allocation7 + $0xc0] sm:$0xff] }
 0x5b6   : > { %v3784_v9 = vpop.eup %3094  ;;  %v1758_v17 = vsel %vm985_vm9, %v3782_v15, 0.0  ;;  %v1387_v19 = vrot.slane %v1386_v14, 1  ;;  %v1511_v20 = vrot.slane %v1510_v11, 2 }
 0x5b7   : > { %v1635_v21 = vrot.slane %v1634_v13, 4  ;;  %v1759_v22 = vsel %vm987_vm8, %v3784_v9, 0.0 }
 0x5b8   : > { %v1760_v23 = vadd.f32 %v1759_v22, %v1758_v17  ;;  %v1388_v25 = vadd.f32 %v1387_v19, %v1386_v14  ;;  %v1512_v26 = vadd.f32 %v1511_v20, %v1510_v11  ;;  %v1949_v14 = vld [vmem:[#allocation7 + $0xd0] sm:$0xff]  ;;  %v1954_v22 = vld [vmem:[#allocation7 + $0xf8] sm:$0xff] }
 0x5b9   : > { %v1636_v27 = vadd.f32 %v1635_v21, %v1634_v13  ;;  %v2031_v19 = vpack.c.bf16 %v1949_v14, %v1947_v12  ;;  %v1952_v21 = vld [vmem:[#allocation7 + $0xe8] sm:$0xff]  ;;  %v1982_v12 = vld [vmem:[#allocation7 + $0x1d8] sm:$0xff] }
 0x5ba   : > { %v3790_v29 = vpop.eup %3096  ;;  %v1761_v30 = vrot.slane %v1760_v23, 4  ;;  %3104 = vrcp.f32 %v1388_v25  ;;  %v1513_v31 = vrot.slane %v1512_v26, 1 }
 0x5bb   : > { %v3792_v32 = vpop.eup %3098  ;;  %v1884_v33 = vsel %vm985_vm9, %v3790_v29, 0.0  ;;  %v1637_v34 = vrot.slane %v1636_v27, 2  ;;  %2080 = vmatpush1.bf16.msra.mxu1 %v2031_v19 }
 0x5bc   : > { %v1762_v35 = vadd.f32 %v1761_v30, %v1760_v23  ;;  %v1885_v37 = vsel %vm987_vm8, %v3792_v32, 0.0  ;;  %v1514_v39 = vadd.f32 %v1513_v31, %v1512_v26  ;;  %v2034_v26 = vpack.c.bf16 %v1954_v22, %v1952_v21  ;;  %v1956_v31 = vld [vmem:[#allocation7 + $0x108] sm:$0xff]  ;;  %v1983_v21 = vld [vmem:[#allocation7 + $0x1e0] sm:$0xff]  ;;  %v1985_v22 = vld [vmem:[#allocation7 + $0x1f0] sm:$0xff] }
 0x5bd   : > { %v3101_v42 = vpop.eup %3100  ;;  %v1886_v28 = vadd.f32 %v1885_v37, %v1884_v33  ;;  %v1638_v24 = vadd.f32 %v1637_v34, %v1636_v27  ;;  %v1951_v27 = vld [vmem:[#allocation7 + $0xe0] sm:$0xff]  ;;  %v1958_v33 = vld [vmem:[#allocation7 + $0x118] sm:$0xff] }
 0x5be   : > { %v3103_v44 = vpop.eup %3102  ;;  %v1138_v45 = vmul.f32 %v3101_v42, %v3736_v6  ;;  %v1139_v46 = vmul.f32 %v3101_v42, %v3738_v10  ;;  %3106 = vrcp.f32 %v1514_v39  ;;  %v1763_v40 = vrot.slane %v1762_v35, 2  ;;  %2081 = vmatprep.subr.bf16.mxu1 %v2034_v26  ;;  %v1955_v39 = vld [vmem:[#allocation7 + $0x100] sm:$0xff]  ;;  %v1990_v26 = vld [vmem:[#allocation7 + $0x218] sm:$0xff] }
 0x5bf   : > { %v1887_v36 = vrot.slane %v1886_v28, 4  ;;  %v1264_v47 = vmul.f32 %v3103_v44, %v3742_v16  ;;  %v1265_v50 = vmul.f32 %v3103_v44, %v3746_v18  ;;  %v1639_v51 = vrot.slane %v1638_v24, 1  ;;  %v1962_v44 = vld [vmem:[#allocation7 + $0x138] sm:$0xff] }
 0x5c0   : > { %v1140_v54 = vsel %vm985_vm9, %v1138_v45, 0.0  ;;  %v1764_v55 = vadd.f32 %v1763_v40, %v1762_v35  ;;  %v1143_v62 = vsel %vm987_vm8, %v1139_v46, 0.0  ;;  %v2036_v35 = vpack.c.bf16 %v1958_v33, %v1956_v31  ;;  %v2238_v33 = vld [vmem:[#allocation8 + $0x8] sm:$0xff] }
 0x5c1   : > { %v1888_v58 = vadd.f32 %v1887_v36, %v1886_v28  ;;  %1141 = vadd.xlane.f32.xlu0 %v1140_v54  ;;  %v1266_v59 = vsel %vm985_vm9, %v1264_v47, 0.0  ;;  %v1640_v60 = vadd.f32 %v1639_v51, %v1638_v24  ;;  %v1269_v3 = vsel %vm987_vm8, %v1265_v50, 0.0  ;;  %v1960_v24 = vld [vmem:[#allocation7 + $0x128] sm:$0xff]  ;;  %v1959_v36 = vld [vmem:[#allocation7 + $0x120] sm:$0xff]  ;;  %v1961_v47 = vld [vmem:[#allocation7 + $0x130] sm:$0xff] }
 0x5c2   : > { %1267 = vadd.xlane.f32.xlu1 %v1266_v59  ;;  %v1765_v6 = vrot.slane %v1764_v55, 1  ;;  %v2038_v40 = vpack.c.bf16 %v1962_v44, %v1960_v24  ;;  %v2037_v50 = vpack.c.bf16 %v1961_v47, %v1959_v36  ;;  %v1964_v51 = vld [vmem:[#allocation7 + $0x148] sm:$0xff]  ;;  %v2260_v36 = vld [vmem:[#allocation8 + $0xb8] sm:$0xff] }
 0x5c3   : > { %3108 = vrcp.f32 %v1640_v60  ;;  %v1889_v10 = vrot.slane %v1888_v58, 2  ;;  %v1968_v60 = vld [vmem:[#allocation7 + $0x168] sm:$0xff] }
 0x5c4   : > { %v3105_v61 = vpop.eup %3104  ;;  %v1766_v63 = vadd.f32 %v1765_v6, %v1764_v55  ;;  %v1963_v55 = vld [vmem:[#allocation7 + $0x140] sm:$0xff]  ;;  %v1970_v6 = vld [vmem:[#allocation7 + $0x178] sm:$0xff] }
 0x5c5   : > { %1144 = vadd.xlane.f32.xlu0 %v1143_v62  ;;  %v1390_v16 = vmul.f32 %v3105_v61, %v3756_v41  ;;  %v1391_v18 = vmul.f32 %v3105_v61, %v3758_v43  ;;  %v1890_v0 = vadd.f32 %v1889_v10, %v1888_v58  ;;  %v1965_v58 = vld [vmem:[#allocation7 + $0x150] sm:$0xff]  ;;  %v2042_v10 = vpack.c.bf16 %v1970_v6, %v1968_v60  ;;  %v1967_v61 = vld [vmem:[#allocation7 + $0x160] sm:$0xff] }
 0x5c6   : > { %3110 = vrcp.f32 %v1766_v63  ;;  %v2039_v59 = vpack.c.bf16 %v1965_v58, %v1963_v55  ;;  %v1969_v62 = vld [vmem:[#allocation7 + $0x170] sm:$0xff] }
 0x5c7   : > { %v1392_v57 = vsel %vm985_vm9, %v1390_v16, 0.0  ;;  %v1891_v1 = vrot.slane %v1890_v0, 1  ;;  %v1395_v41 = vsel %vm987_vm8, %v1391_v18, 0.0  ;;  %v2041_v63 = vpack.c.bf16 %v1969_v62, %v1967_v61  ;;  %v1972_v16 = vld [vmem:[#allocation7 + $0x188] sm:$0xff]  ;;  %v1974_v18 = vld [vmem:[#allocation7 + $0x198] sm:$0xff] }
 0x5c8   : > { %v3107_v52 = vpop.eup %3106  ;;  %1393 = vadd.xlane.f32.xlu1 %v1392_v57  ;;  %v1971_v57 = vld [vmem:[#allocation7 + $0x180] sm:$0xff] }
 0x5c9   : > { %1270 = vadd.xlane.f32.xlu0 %v1269_v3  ;;  %v1516_v4 = vmul.f32 %v3107_v52, %v3766_v53  ;;  %v1517_v5 = vmul.f32 %v3107_v52, %v3768_v56  ;;  %v1892_v8 = vadd.f32 %v1891_v1, %v1890_v0  ;;  %v2044_v0 = vpack.c.bf16 %v1974_v18, %v1972_v16  ;;  %v1973_v1 = vld [vmem:[#allocation7 + $0x190] sm:$0xff]  ;;  %v1976_v3 = vld [vmem:[#allocation7 + $0x1a8] sm:$0xff] }
 0x5ca   : > { %v2043_v52 = vpack.c.bf16 %v1973_v1, %v1971_v57 }
 0x5cb   : > { %v1518_v11 = vsel %vm985_vm9, %v1516_v4, 0.0  ;;  %3112 = vrcp.f32 %v1892_v8  ;;  %v1521_v53 = vsel %vm987_vm8, %v1517_v5, 0.0  ;;  %v1978_v4 = vld [vmem:[#allocation7 + $0x1b8] sm:$0xff]  ;;  %v1975_v8 = vld [vmem:[#allocation7 + $0x1a0] sm:$0xff] }
 0x5cc   : > { %1519 = vadd.xlane.f32.xlu1 %v1518_v11  ;;  %v2046_v5 = vpack.c.bf16 %v1978_v4, %v1976_v3  ;;  %v1977_v11 = vld [vmem:[#allocation7 + $0x1b0] sm:$0xff] }
 0x5cd   : > { %v3109_v43 = vpop.eup %3108  ;;  %1396 = vadd.xlane.f32.xlu0 %v1395_v41  ;;  %v2045_v41 = vpack.c.bf16 %v1977_v11, %v1975_v8 }
 0x5ce   : > { %v1642_v13 = vmul.f32 %v3109_v43, %v3774_v2  ;;  %v1643_v17 = vmul.f32 %v3109_v43, %v3776_v7  ;;  %v1953_v2 = vld [vmem:[#allocation7 + $0xf0] sm:$0xff]  ;;  %v1980_v43 = vld [vmem:[#allocation7 + $0x1c8] sm:$0xff] }
 0x5cf   : > { %v2033_v30 = vpack.c.bf16 %v1953_v2, %v1951_v27  ;;  %v2048_v14 = vpack.c.bf16 %v1982_v12, %v1980_v43  ;;  %v2253_v2 = vld [vmem:[#allocation8 + $0x80] sm:$0xff] }
 0x5d0   : > { %v3111_v20 = vpop.eup %3110  ;;  %v1644_v56 = vsel %vm985_vm9, %v1642_v13, 0.0  ;;  %v1647_v34 = vsel %vm987_vm8, %v1643_v17, 0.0  ;;  %v1979_v13 = vld [vmem:[#allocation7 + $0x1c0] sm:$0xff]  ;;  %v1981_v17 = vld [vmem:[#allocation7 + $0x1d0] sm:$0xff] }
 0x5d1   : > { %1522 = vadd.xlane.f32.xlu0 %v1521_v53  ;;  %1645 = vadd.xlane.f32.xlu1 %v1644_v56  ;;  %v1768_v23 = vmul.f32 %v3111_v20, %v3782_v15  ;;  %v1769_v25 = vmul.f32 %v3111_v20, %v3784_v9  ;;  %v1957_v15 = vld [vmem:[#allocation7 + $0x110] sm:$0xff]  ;;  %v2047_v19 = vpack.c.bf16 %v1981_v17, %v1979_v13  ;;  %v1984_v20 = vld [vmem:[#allocation7 + $0x1e8] sm:$0xff]  ;;  %v1986_v53 = vld [vmem:[#allocation7 + $0x1f8] sm:$0xff] }
 0x5d2   : > { %2082 = vmatpush1.bf16.msra.mxu1 %v2033_v30  ;;  %v2035_v28 = vpack.c.bf16 %v1957_v15, %v1955_v39  ;;  %v2050_v56 = vpack.c.bf16 %v1986_v53, %v1984_v20  ;;  %v2254_v30 = vld [vmem:[#allocation8 + $0x88] sm:$0xff]  ;;  %v2239_v15 = vld [vmem:[#allocation8 + $0x10] sm:$0xff] }
 0x5d3   : > { %v1770_v7 = vsel %vm985_vm9, %v1768_v23, 0.0  ;;  %2083 = vmatprep.subr.bf16.mxu1 %v2036_v35  ;;  %v1773_v45 = vsel %vm987_vm8, %v1769_v25, 0.0  ;;  %v2049_v23 = vpack.c.bf16 %v1985_v22, %v1983_v21  ;;  %v1988_v25 = vld [vmem:[#allocation7 + $0x208] sm:$0xff]  ;;  %v2341_v31 = vpack.c.bf16 %v2254_v30, %v2253_v2  ;;  %v2256_v35 = vld [vmem:[#allocation8 + $0x98] sm:$0xff]  ;;  %v1989_v2 = vld [vmem:[#allocation7 + $0x210] sm:$0xff] }
 0x5d4   : > { %v2052_v27 = vpack.c.bf16 %v1990_v26, %v1988_v25  ;;  %v1019_v55 = vpop.xlane.xlu1 %1018  ;;  %v1992_v30 = vld [vmem:[#allocation7 + $0x228] sm:$0xff] }
 0x5d5   : > { %v3113_v37 = vpop.eup %3112  ;;  %1648 = vadd.xlane.f32.xlu0 %v1647_v34  ;;  %1771 = vadd.xlane.f32.xlu1 %v1770_v7  ;;  %v2237_v7 = vld [vmem:[#allocation8] sm:$0xff]  ;;  %v2255_v34 = vld [vmem:[#allocation8 + $0x90] sm:$0xff] }
 0x5d6   : > { %v1894_v9 = vmul.f32 %v3113_v37, %v3790_v29  ;;  %v1895_v42 = vmul.f32 %v3113_v37, %v3792_v32  ;;  %2084 = vmatpush1.bf16.msra.mxu1 %v2035_v28  ;;  %v1966_v29 = vld [vmem:[#allocation7 + $0x158] sm:$0xff]  ;;  %v2333_v37 = vpack.c.bf16 %v2238_v33, %v2237_v7  ;;  %v2342_v39 = vpack.c.bf16 %v2256_v35, %v2255_v34  ;;  %v2258_v28 = vld [vmem:[#allocation8 + $0xa8] sm:$0xff] }
 0x5d7   : > { %2085 = vmatprep.subr.bf16.mxu1 %v2038_v40  ;;  %v2040_v54 = vpack.c.bf16 %v1966_v29, %v1964_v51  ;;  %2740 = vmatprep.subr.bf16.mxu0 %v2341_v31  ;;  %v2259_v40 = vld [vmem:[#allocation8 + $0xb0] sm:$0xff]  ;;  %v2244_v29 = vld [vmem:[#allocation8 + $0x38] sm:$0xff] }
 0x5d8   : > { %v1896_v46 = vsel %vm985_vm9, %v1894_v9, 0.0  ;;  %v1899_v32 = vsel %vm987_vm8, %v1895_v42, 0.0  ;;  %v2240_v9 = vld [vmem:[#allocation8 + $0x18] sm:$0xff]  ;;  %v2257_v42 = vld [vmem:[#allocation8 + $0xa0] sm:$0xff]  ;;  %2741 = vmatpush3.bf16.msra.mxu0 %v2333_v37  ;;  %v2243_v51 = vld [vmem:[#allocation8 + $0x30] sm:$0xff] }
 0x5d9   : > { %1774 = vadd.xlane.f32.xlu0 %v1773_v45  ;;  %1897 = vadd.xlane.f32.xlu1 %v1896_v46  ;;  %v2334_v24 = vpack.c.bf16 %v2240_v9, %v2239_v15  ;;  %v2343_v44 = vpack.c.bf16 %v2258_v28, %v2257_v42  ;;  %v2241_v45 = vld [vmem:[#allocation8 + $0x20] sm:$0xff]  ;;  %v2242_v46 = vld [vmem:[#allocation8 + $0x28] sm:$0xff]  ;;  %v1994_v7 = vld [vmem:[#allocation7 + $0x238] sm:$0xff] }
 0x5da   : > { %2086 = vmatpush1.bf16.msra.mxu1 %v2037_v50  ;;  %2742 = vmatprep.subr.bf16.mxu0 %v2342_v39  ;;  %v2335_v47 = vpack.c.bf16 %v2242_v46, %v2241_v45  ;;  %v2344_v50 = vpack.c.bf16 %v2260_v36, %v2259_v40  ;;  %v2054_v35 = vpack.c.bf16 %v1994_v7, %v1992_v30  ;;  %v1991_v37 = vld [vmem:[#allocation7 + $0x220] sm:$0xff]  ;;  %v1993_v39 = vld [vmem:[#allocation7 + $0x230] sm:$0xff]  ;;  %v1998_v15 = vld [vmem:[#allocation7 + $0x258] sm:$0xff] }
 0x5db   : > { %2087 = vmatprep.subr.bf16.mxu1 %v2040_v54  ;;  %v1016_v54 = vpop.xlane.xlu0 %1015  ;;  %v2053_v9 = vpack.c.bf16 %v1993_v39, %v1991_v37  ;;  %v1995_v28 = vld [vmem:[#allocation7 + $0x240] sm:$0xff]  ;;  %v2002_v45 = vld [vmem:[#allocation7 + $0x278] sm:$0xff]  ;;  %v2251_v37 = vld [vmem:[#allocation8 + $0x70] sm:$0xff] }
 0x5dc   : > { %2743 = vmatpush3.bf16.msra.mxu0 %v2334_v24  ;;  %v1997_v24 = vld [vmem:[#allocation7 + $0x250] sm:$0xff]  ;;  %v1999_v36 = vld [vmem:[#allocation7 + $0x260] sm:$0xff]  ;;  %v2252_v39 = vld [vmem:[#allocation8 + $0x78] sm:$0xff] }
 0x5dd   : > { %1900 = vadd.xlane.f32.xlu0 %v1899_v32  ;;  %2744 = vmatprep.subr.bf16.mxu0 %v2343_v44  ;;  %v2336_v32 = vpack.c.bf16 %v2244_v29, %v2243_v51  ;;  %v2000_v44 = vld [vmem:[#allocation7 + $0x268] sm:$0xff]  ;;  %v2055_v46 = vpack.c.bf16 %v1997_v24, %v1995_v28  ;;  %v2006_v51 = vld [vmem:[#allocation7 + $0x298] sm:$0xff]  ;;  %v2249_v7 = vld [vmem:[#allocation8 + $0x60] sm:$0xff]  ;;  %v2155_v28 = vlaneseq }
 0x5de   : > { %2088 = vmatpush1.bf16.msra.mxu1 %v2039_v59  ;;  %v2058_v40 = vpack.c.bf16 %v2002_v45, %v2000_v44  ;;  %v2153_v45 = vld [vmem:[%s3925_s9] sm:$0x3] }
 0x5df   : > { %2089 = vmatprep.subr.bf16.mxu1 %v2042_v10  ;;  %v2156_v24 = vshrl.u32 %v2155_v28, 7 }
 0x5e0   : > { %2745 = vmatpush3.bf16.msra.mxu0 %v2335_v47  ;;  %v2001_v47 = vld [vmem:[#allocation7 + $0x270] sm:$0xff] }
 0x5e1   : > { %2746 = vmatprep.subr.bf16.mxu0 %v2344_v50  ;;  %v2004_v50 = vld [vmem:[#allocation7 + $0x288] sm:$0xff]  ;;  %v2057_v29 = vpack.c.bf16 %v2001_v47, %v1999_v36  ;;  %v2157_v44 = vsub.s32 0, %v2156_v24 }
 0x5e2   : > { %2090 = vmatpush1.bf16.msra.mxu1 %v2041_v63 }
 0x5e3   : > { %2091 = vmatprep.subr.bf16.mxu1 %v2044_v0  ;;  %v2158_v36 = vrot.slane %v2153_v45, %v2157_v44 }
 0x5e4   : > { %2747 = vmatpush3.bf16.msra.mxu0 %v2336_v32  ;;  %v2060_v32 = vpack.c.bf16 %v2006_v51, %v2004_v50 }
 0x5e6   : > { %2092 = vmatpush1.bf16.msra.mxu1 %v2043_v52 }
 0x5e7   : > { %2093 = vmatprep.subr.bf16.mxu1 %v2046_v5 }
 0x5ea   : > { %2094 = vmatpush1.bf16.msra.mxu1 %v2045_v41 }
 0x5eb   : > { %2095 = vmatprep.subr.bf16.mxu1 %v2048_v14 }
 0x5ee   : > { %2096 = vmatpush1.bf16.msra.mxu1 %v2047_v19 }
 0x5ef   : > { %2097 = vmatprep.subr.bf16.mxu1 %v2050_v56 }
 0x5f2   : > { %2098 = vmatpush1.bf16.msra.mxu1 %v2049_v23 }
 0x5f3   : > { %2110 = vmatprep.subr.bf16.mxu1 %v2052_v27  ;;  %v1987_v27 = vld [vmem:[#allocation7 + $0x200] sm:$0xff] }
 0x5f4   : > { %v2051_v34 = vpack.c.bf16 %v1989_v2, %v1987_v27  ;;  %v2265_v27 = vld [vmem:[#allocation8 + $0xe0] sm:$0xff]  ;;  %v2266_v2 = vld [vmem:[#allocation8 + $0xe8] sm:$0xff] }
 0x5f5   : > { %v2347_v30 = vpack.c.bf16 %v2266_v2, %v2265_v27 }
 0x64e   : > { %v1142_v58 = vpop.xlane.xlu0 %1141 }
 0x64f   : > { %v1268_v59 = vpop.xlane.xlu1 %1267  ;;  %v1146_v61 = vadd.f32 %v1142_v58, %v1016_v54  ;;  %v2003_v54 = vld [vmem:[#allocation7 + $0x280] sm:$0xff]  ;;  %v2010_v58 = vld [vmem:[#allocation7 + $0x2b8] sm:$0xff] }
 0x651   : > { %v1272_v16 = vadd.f32 %v1268_v59, %v1146_v61  ;;  %v2012_v61 = vld [vmem:[#allocation7 + $0x2c8] sm:$0xff] }
 0x652   : > { %v1145_v60 = vpop.xlane.xlu0 %1144 }
 0x653   : > { %v1147_v57 = vadd.f32 %v1145_v60, %v1019_v55  ;;  %v2008_v55 = vld [vmem:[#allocation7 + $0x2a8] sm:$0xff] }
 0x654   : > { %v2062_v60 = vpack.c.bf16 %v2010_v58, %v2008_v55 }
 0x655   : > { %v1394_v6 = vpop.xlane.xlu1 %1393 }
 0x656   : > { %v1271_v10 = vpop.xlane.xlu0 %1270  ;;  %v1398_v1 = vadd.f32 %v1394_v6, %v1272_v16  ;;  %v2007_v6 = vld [vmem:[#allocation7 + $0x2a0] sm:$0xff] }
 0x657   : > { %v1273_v52 = vadd.f32 %v1271_v10, %v1147_v57  ;;  %v2009_v10 = vld [vmem:[#allocation7 + $0x2b0] sm:$0xff]  ;;  %v2016_v57 = vld [vmem:[#allocation7 + $0x2e8] sm:$0xff] }
 0x659   : > { %v1520_v62 = vpop.xlane.xlu1 %1519 }
 0x65a   : > { %v1397_v63 = vpop.xlane.xlu0 %1396  ;;  %v1524_v3 = vadd.f32 %v1520_v62, %v1398_v1  ;;  %v2014_v62 = vld [vmem:[#allocation7 + $0x2d8] sm:$0xff] }
 0x65b   : > { %v1399_v8 = vadd.f32 %v1397_v63, %v1273_v52  ;;  %v2061_v63 = vpack.c.bf16 %v2009_v10, %v2007_v6  ;;  %v2064_v16 = vpack.c.bf16 %v2014_v62, %v2012_v61  ;;  %v2018_v1 = vld [vmem:[#allocation7 + $0x2f8] sm:$0xff] }
 0x65e   : > { %v1523_v18 = vpop.xlane.xlu0 %1522  ;;  %v1646_v0 = vpop.xlane.xlu1 %1645 }
 0x65f   : > { %v1650_v11 = vadd.f32 %v1646_v0, %v1524_v3  ;;  %v1525_v41 = vadd.f32 %v1523_v18, %v1399_v8  ;;  %v2011_v18 = vld [vmem:[#allocation7 + $0x2c0] sm:$0xff]  ;;  %v2013_v0 = vld [vmem:[#allocation7 + $0x2d0] sm:$0xff]  ;;  %v2066_v3 = vpack.c.bf16 %v2018_v1, %v2016_v57 }
 0x660   : > { %v2063_v52 = vpack.c.bf16 %v2013_v0, %v2011_v18 }
 0x662   : > { %v1649_v4 = vpop.xlane.xlu0 %1648  ;;  %v1772_v5 = vpop.xlane.xlu1 %1771 }
 0x663   : > { %v1776_v43 = vadd.f32 %v1772_v5, %v1650_v11  ;;  %v1651_v13 = vadd.f32 %v1649_v4, %v1525_v41  ;;  %v2015_v4 = vld [vmem:[#allocation7 + $0x2e0] sm:$0xff]  ;;  %v2017_v5 = vld [vmem:[#allocation7 + $0x2f0] sm:$0xff] }
 0x664   : > { %v2065_v41 = vpack.c.bf16 %v2017_v5, %v2015_v4  ;;  %v2269_v4 = vld [vmem:[#allocation8 + $0x100] sm:$0xff]  ;;  %v2270_v5 = vld [vmem:[#allocation8 + $0x108] sm:$0xff] }
 0x666   : > { %v1775_v12 = vpop.xlane.xlu0 %1774  ;;  %v1898_v14 = vpop.xlane.xlu1 %1897 }
 0x667   : > { %v1902_v17 = vadd.f32 %v1898_v14, %v1776_v43  ;;  %v1777_v19 = vadd.f32 %v1775_v12, %v1651_v13  ;;  %v2261_v14 = vld [vmem:[#allocation8 + $0xc0] sm:$0xff]  ;;  %v2262_v13 = vld [vmem:[#allocation8 + $0xc8] sm:$0xff] }
 0x669   : > { %v1904_v20 = vmul.f32 0.125, %v1902_v17  ;;  %v2345_v17 = vpack.c.bf16 %v2262_v13, %v2261_v14  ;;  %v2349_v13 = vpack.c.bf16 %v2270_v5, %v2269_v4 }
 0x66a   : > { %v1901_v53 = vpop.xlane.xlu0 %1900 }
 0x66b   : > { %v1903_v56 = vadd.f32 %v1901_v53, %v1777_v19  ;;  %v3827_v21 = vmul.f32 %v1904_v20, %v3629_v49  ;;  %v2245_v19 = vld [vmem:[#allocation8 + $0x40] sm:$0xff]  ;;  %v2246_v20 = vld [vmem:[#allocation8 + $0x48] sm:$0xff]  ;;  %2748 = vmatprep.subr.bf16.mxu0 %v2345_v17  ;;  %v2287_v17 = vld [vmem:[#allocation8 + $0x190] sm:$0xff] }
 0x66c   : > { %v2337_v53 = vpack.c.bf16 %v2246_v20, %v2245_v19  ;;  %v2288_v19 = vld [vmem:[#allocation8 + $0x198] sm:$0xff] }
 0x66d   : > { %v1905_v22 = vmul.f32 0.125, %v1903_v56  ;;  %v1910_v25 = vrot.slane %v3827_v21, 1  ;;  %v1915_v11 = vrot.slane %v3827_v21, 2  ;;  %v2263_v56 = vld [vmem:[#allocation8 + $0xd0] sm:$0xff] }
 0x66e   : > { %2749 = vmatpush3.bf16.msra.mxu0 %v2337_v53 }
 0x66f   : > { %v3830_v23 = vmul.f32 %v1905_v22, %v3627_v48  ;;  %v1996_v48 = vld [vmem:[#allocation7 + $0x248] sm:$0xff]  ;;  %v2264_v22 = vld [vmem:[#allocation8 + $0xd8] sm:$0xff] }
 0x670   : > { %v2056_v42 = vpack.c.bf16 %v1998_v15, %v1996_v48  ;;  %v2340_v48 = vpack.c.bf16 %v2252_v39, %v2251_v37  ;;  %v2285_v15 = vld [vmem:[#allocation8 + $0x180] sm:$0xff] }
 0x671   : > { %v1911_v26 = vrot.slane %v3830_v23, 1  ;;  %v1920_v49 = vpack.c.bf16 %v3830_v23, %v3827_v21  ;;  %v1916_v8 = vrot.slane %v3830_v23, 2  ;;  %v2346_v23 = vpack.c.bf16 %v2264_v22, %v2263_v56  ;;  %v2247_v21 = vld [vmem:[#allocation8 + $0x50] sm:$0xff] }
 0x673   : > { %v1912_v31 = vsel %vm532_vm0, %v1910_v25, %v1911_v26  ;;  %v1917_v43 = vsel %vm547_vm1, %v1915_v11, %v1916_v8  ;;  %v2248_v25 = vld [vmem:[#allocation8 + $0x58] sm:$0xff]  ;;  %2750 = vmatprep.subr.bf16.mxu0 %v2346_v23 }
 0x674   : > { %v1921_v33 = vpack.c.bf16 %v1911_v26, %v1912_v31  ;;  %v1922_v12 = vpack.c.bf16 %v1916_v8, %v1917_v43  ;;  %v2338_v26 = vpack.c.bf16 %v2248_v25, %v2247_v21  ;;  %v2250_v31 = vld [vmem:[#allocation8 + $0x68] sm:$0xff] }
 0x676   : > { %2099 = vmatprep.mubr.bf16.mxu1 %v1921_v33  ;;  %2751 = vmatpush3.bf16.msra.mxu0 %v2338_v26  ;;  %v2339_v33 = vpack.c.bf16 %v2250_v31, %v2249_v7  ;;  %v2271_v7 = vld [vmem:[#allocation8 + $0x110] sm:$0xff]  ;;  %v2272_v31 = vld [vmem:[#allocation8 + $0x118] sm:$0xff] }
 0x677   : > { %2100 = vmatmul.mubr.bf16.vlgmr.msra.gmra.mrb[12].mxu1 %v1920_v49  ;;  %2752 = vmatprep.subr.bf16.mxu0 %v2347_v30  ;;  %v2268_v49 = vld [vmem:[#allocation8 + $0xf8] sm:$0xff]  ;;  %v2358_v30 = vpack.c.bf16 %v2288_v19, %v2287_v17  ;;  %v2350_v28 = vpack.c.bf16 %v2272_v31, %v2271_v7  ;;  %v2302_v17 = vld [vmem:[#allocation8 + $0x208] sm:$0xff]  ;;  %v2319_v19 = vld [vmem:[#allocation8 + $0x290] sm:$0xff] }
 0x678   : > { %2111 = vmatpush1.bf16.msra.mxu1 %v2051_v34  ;;  %2142 = vmatprep.mubr.bf16.mxu1 %v3312_v38  ;;  %v2005_v38 = vld [vmem:[#allocation7 + $0x290] sm:$0xff]  ;;  %v2324_v31 = vld [vmem:[#allocation8 + $0x2b8] sm:$0xff] }
 0x679   : > { %2112 = vmatprep.subr.bf16.mxu1 %v2054_v35  ;;  %v2059_v59 = vpack.c.bf16 %v2005_v38, %v2003_v54  ;;  %v2267_v34 = vld [vmem:[#allocation8 + $0xf0] sm:$0xff] }
 0x67a   : > { %2753 = vmatpush3.bf16.msra.mxu0 %v2339_v33  ;;  %v2348_v35 = vpack.c.bf16 %v2268_v49, %v2267_v34  ;;  %v2289_v49 = vld [vmem:[#allocation8 + $0x1a0] sm:$0xff]  ;;  %v2323_v7 = vld [vmem:[#allocation8 + $0x2b0] sm:$0xff] }
 0x67c   : > { %2113 = vmatpush1.bf16.msra.mxu1 %v2053_v9  ;;  %2754 = vmatprep.subr.bf16.mxu0 %v2348_v35  ;;  %v2286_v9 = vld [vmem:[#allocation8 + $0x188] sm:$0xff] }
 0x67d   : > { %2114 = vmatprep.subr.bf16.mxu1 %v2056_v42  ;;  %v2357_v42 = vpack.c.bf16 %v2286_v9, %v2285_v15  ;;  %v2290_v35 = vld [vmem:[#allocation8 + $0x1a8] sm:$0xff] }
 0x67e   : > { %2755 = vmatpush3.bf16.msra.mxu0 %v2340_v48 }
 0x67f   : > { %2762 = vmatprep.subr.bf16.mxu0 %v2357_v42 }
 0x680   : > { %2115 = vmatpush1.bf16.msra.mxu1 %v2055_v46  ;;  %v2161_v46 = vsub.s32 1, %v2156_v24  ;;  %v2359_v24 = vpack.c.bf16 %v2290_v35, %v2289_v49  ;;  %v2307_v49 = vld [vmem:[#allocation8 + $0x230] sm:$0xff]  ;;  %v2308_v35 = vld [vmem:[#allocation8 + $0x238] sm:$0xff] }
 0x681   : > { %2116 = vmatprep.subr.bf16.mxu1 %v2058_v40  ;;  %v2169_v40 = vld [vmem:[%s3926_s10] sm:$0x3] }
 0x682   : > { %v2162_v47 = vrot.slane %v2153_v45, %v2161_v46  ;;  %v2174_v50 = vrot.slane %v2169_v40, %v2157_v44  ;;  %v2273_v44 = vld [vmem:[#allocation8 + $0x120] sm:$0xff]  ;;  %v2274_v45 = vld [vmem:[#allocation8 + $0x128] sm:$0xff] }
 0x684   : > { %2117 = vmatpush1.bf16.msra.mxu1 %v2057_v29  ;;  %v2178_v29 = vrot.slane %v2169_v40, %v2161_v46  ;;  %v2291_v46 = vld [vmem:[#allocation8 + $0x1b0] sm:$0xff]  ;;  %v2292_v40 = vld [vmem:[#allocation8 + $0x1b8] sm:$0xff] }
 0x685   : > { %2118 = vmatprep.subr.bf16.mxu1 %v2060_v32 }
 0x688   : > { %2119 = vmatpush1.bf16.msra.mxu1 %v2059_v59 }
 0x689   : > { %2120 = vmatprep.subr.bf16.mxu1 %v2062_v60 }
 0x68c   : > { %2121 = vmatpush1.bf16.msra.mxu1 %v2061_v63 }
 0x68d   : > { %2122 = vmatprep.subr.bf16.mxu1 %v2064_v16 }
 0x690   : > { %2123 = vmatpush1.bf16.msra.mxu1 %v2063_v52 }
 0x691   : > { %2124 = vmatprep.subr.bf16.mxu1 %v2066_v3 }
 0x694   : > { %2125 = vmatpush1.bf16.msra.mxu1 %v2065_v41 }
 0x697   : > { %2143 = vmatmul.mubr.bf16.vlgmr.msra.gmra.mrb[12].mxu1 %v1922_v12 }
 0x76a   : > { %v2144_v51 = vpop.f32.mrb[12].mxu1 }
 0x76b   : > { %v2165_v32 = vmul.f32 %v2158_v36, %v2144_v51  ;;  %v2146_v54 = vpop.f32.mrb[13].mxu1  ;;  %v2276_v51 = vld [vmem:[#allocation8 + $0x138] sm:$0xff] }
 0x76c   : > { %v2166_v38 = vmul.f32 %v2162_v47, %v2146_v54  ;;  %v2148_v55 = vpop.f32.mrb[14].mxu1 }
 0x76d   : > { %v2181_v58 = vadd.f32 %v2174_v50, %v2165_v32  ;;  %v2167_v59 = vmul.f32 %v2158_v36, %v2148_v55  ;;  %v2150_v60 = vpop.f32.mrb[15].mxu1  ;;  %v2351_v36 = vpack.c.bf16 %v2274_v45, %v2273_v44  ;;  %v2294_v32 = vld [vmem:[#allocation8 + $0x1c8] sm:$0xff]  ;;  %v2277_v55 = vld [vmem:[#allocation8 + $0x140] sm:$0xff]  ;;  %v2328_v44 = vld [vmem:[#allocation8 + $0x2d8] sm:$0xff] }
 0x76e   : > { %v2182_v6 = vadd.f32 %v2178_v29, %v2166_v38  ;;  %v2168_v10 = vmul.f32 %v2162_v47, %v2150_v60  ;;  %v2360_v47 = vpack.c.bf16 %v2292_v40, %v2291_v46  ;;  %v2296_v60 = vld [vmem:[#allocation8 + $0x1d8] sm:$0xff]  ;;  %v2311_v40 = vld [vmem:[#allocation8 + $0x250] sm:$0xff] }
 0x76f   : > { %v2185_v61 = vmax.f32 %v2181_v58, 0.0  ;;  %v2183_v62 = vadd.f32 %v2174_v50, %v2167_v59  ;;  %v2275_v50 = vld [vmem:[#allocation8 + $0x130] sm:$0xff]  ;;  %v2278_v58 = vld [vmem:[#allocation8 + $0x148] sm:$0xff] }
 0x770   : > { %v2186_v63 = vmax.f32 %v2182_v6, 0.0  ;;  %v2184_v16 = vadd.f32 %v2178_v29, %v2168_v10  ;;  %v2293_v29 = vld [vmem:[#allocation8 + $0x1c0] sm:$0xff]  ;;  %v2352_v54 = vpack.c.bf16 %v2276_v51, %v2275_v50  ;;  %v2295_v59 = vld [vmem:[#allocation8 + $0x1d0] sm:$0xff]  ;;  %v2353_v6 = vpack.c.bf16 %v2278_v58, %v2277_v55  ;;  %v2330_v50 = vld [vmem:[#allocation8 + $0x2e8] sm:$0xff] }
 0x771   : > { %v2187_v18 = vmax.f32 %v2183_v62, 0.0  ;;  %v2193_v57 = vrot.slane %v2185_v61, 1  ;;  %v2361_v38 = vpack.c.bf16 %v2294_v32, %v2293_v29  ;;  %v2362_v10 = vpack.c.bf16 %v2296_v60, %v2295_v59  ;;  %v2280_v62 = vld [vmem:[#allocation8 + $0x158] sm:$0xff]  ;;  %v2313_v32 = vld [vmem:[#allocation8 + $0x260] sm:$0xff]  ;;  %v2315_v60 = vld [vmem:[#allocation8 + $0x270] sm:$0xff] }
 0x772   : > { %v2188_v0 = vmax.f32 %v2184_v16, 0.0  ;;  %v2196_v52 = vrot.slane %v2186_v63, 1  ;;  %v2298_v16 = vld [vmem:[#allocation8 + $0x1e8] sm:$0xff]  ;;  %v2332_v55 = vld [vmem:[#allocation8 + $0x2f8] sm:$0xff] }
 0x773   : > { %v2194_v1 = vrot.slane %v2187_v18, 1 }
 0x774   : > { %v2197_v3 = vrot.slane %v2188_v0, 1 }
 0x775   : > { %v2195_v8 = vsel %vm532_vm0, %v2193_v57, %v2194_v1  ;;  %v2205_v11 = vmax.f32 %v2187_v18, %v2194_v1  ;;  %v2281_v57 = vld [vmem:[#allocation8 + $0x160] sm:$0xff]  ;;  %v2282_v1 = vld [vmem:[#allocation8 + $0x168] sm:$0xff] }
 0x776   : > { %v2203_v41 = vmax.f32 %v2185_v61, %v2195_v8  ;;  %v2206_v43 = vmax.f32 %v2188_v0, %v2197_v3  ;;  %v2198_v12 = vsel %vm532_vm0, %v2196_v52, %v2197_v3  ;;  %v2279_v61 = vld [vmem:[#allocation8 + $0x150] sm:$0xff]  ;;  %v2300_v3 = vld [vmem:[#allocation8 + $0x1f8] sm:$0xff]  ;;  %v2355_v4 = vpack.c.bf16 %v2282_v1, %v2281_v57 }
 0x777   : > { %v2204_v14 = vmax.f32 %v2186_v63, %v2198_v12  ;;  %v2212_v20 = vrot.slane %v2205_v11, 1  ;;  %v2222_v53 = vrot.slane %v2205_v11, 2  ;;  %v2297_v63 = vld [vmem:[#allocation8 + $0x1e0] sm:$0xff]  ;;  %v2354_v18 = vpack.c.bf16 %v2280_v62, %v2279_v61  ;;  %v2299_v52 = vld [vmem:[#allocation8 + $0x1f0] sm:$0xff] }
 0x778   : > { %v2231_v56 = vpack.c.bf16 %v2205_v11, %v2203_v41  ;;  %v2215_v22 = vrot.slane %v2206_v43, 1  ;;  %v2211_v23 = vrot.slane %v2203_v41, 1  ;;  %v2225_v21 = vrot.slane %v2206_v43, 2  ;;  %v2283_v8 = vld [vmem:[#allocation8 + $0x170] sm:$0xff]  ;;  %v2284_v11 = vld [vmem:[#allocation8 + $0x178] sm:$0xff] }
 0x779   : > { %v2232_v25 = vpack.c.bf16 %v2206_v43, %v2204_v14  ;;  %v2214_v26 = vrot.slane %v2204_v14, 1  ;;  %v2224_v27 = vrot.slane %v2204_v14, 2  ;;  %v2221_v2 = vrot.slane %v2203_v41, 2  ;;  %v2317_v41 = vld [vmem:[#allocation8 + $0x280] sm:$0xff]  ;;  %v2318_v43 = vld [vmem:[#allocation8 + $0x288] sm:$0xff] }
 0x77a   : > { %v2213_v33 = vsel %vm532_vm0, %v2211_v23, %v2212_v20  ;;  %v2363_v0 = vpack.c.bf16 %v2298_v16, %v2297_v63  ;;  %v2364_v5 = vpack.c.bf16 %v2300_v3, %v2299_v52  ;;  %v2356_v12 = vpack.c.bf16 %v2284_v11, %v2283_v8  ;;  %v2304_v23 = vld [vmem:[#allocation8 + $0x218] sm:$0xff] }
 0x77b   : > { %2413 = vmatprep.mubr.bf16.mxu0 %v2232_v25  ;;  %v2216_v34 = vsel %vm532_vm0, %v2214_v26, %v2215_v22  ;;  %v3851_v37 = vpack.c.bf16 %v2212_v20, %v2213_v33  ;;  %v2226_v39 = vsel %vm547_vm1, %v2224_v27, %v2225_v21  ;;  %v2223_v48 = vsel %vm547_vm1, %v2221_v2, %v2222_v53  ;;  %v2320_v20 = vld [vmem:[#allocation8 + $0x298] sm:$0xff]  ;;  %v2322_v25 = vld [vmem:[#allocation8 + $0x2a8] sm:$0xff]  ;;  %v2305_v2 = vld [vmem:[#allocation8 + $0x220] sm:$0xff] }
 0x77c   : > { %2414 = vmatmul.mubr.bf16.vlgmr.msra.gmra.mrb[20].mxu0 %v2231_v56  ;;  %v2234_v15 = vpack.c.bf16 %v2215_v22, %v2216_v34  ;;  %v3855_v9 = vpack.c.bf16 %v2225_v21, %v2226_v39  ;;  %v3857_v42 = vpack.c.bf16 %v2222_v53, %v2223_v48  ;;  %v2373_v14 = vpack.c.bf16 %v2318_v43, %v2317_v41  ;;  %v2303_v22 = vld [vmem:[#allocation8 + $0x210] sm:$0xff]  ;;  %v2321_v21 = vld [vmem:[#allocation8 + $0x2a0] sm:$0xff]  ;;  %v2326_v48 = vld [vmem:[#allocation8 + $0x2c8] sm:$0xff] }
 0x77d   : > { %2763 = vmatpush3.bf16.msra.mxu0 %v2349_v13  ;;  %v2301_v13 = vld [vmem:[#allocation8 + $0x200] sm:$0xff]  ;;  %v2374_v56 = vpack.c.bf16 %v2320_v20, %v2319_v19  ;;  %v2366_v26 = vpack.c.bf16 %v2304_v23, %v2303_v22  ;;  %v2375_v27 = vpack.c.bf16 %v2322_v25, %v2321_v21  ;;  %v2376_v34 = vpack.c.bf16 %v2324_v31, %v2323_v7 }
 0x77e   : > { %2454 = vmatprep.mubr.bf16.mxu0 %v2234_v15  ;;  %2764 = vmatprep.subr.bf16.mxu0 %v2358_v30  ;;  %v2365_v53 = vpack.c.bf16 %v2302_v17, %v2301_v13  ;;  %v2306_v30 = vld [vmem:[#allocation8 + $0x228] sm:$0xff]  ;;  %v2325_v39 = vld [vmem:[#allocation8 + $0x2c0] sm:$0xff] }
 0x77f   : > { %v2367_v33 = vpack.c.bf16 %v2306_v30, %v2305_v2  ;;  %v2377_v15 = vpack.c.bf16 %v2326_v48, %v2325_v39  ;;  %v2700_v20 = vld [vmem:[%s3974_s25] ss:$0 sm:$0xff] }
 0x781   : > { %2765 = vmatpush3.bf16.msra.mxu0 %v2350_v28  ;;  %v2310_v28 = vld [vmem:[#allocation8 + $0x248] sm:$0xff] }
 0x782   : > { %2766 = vmatprep.subr.bf16.mxu0 %v2359_v24  ;;  %v2327_v24 = vld [vmem:[#allocation8 + $0x2d0] sm:$0xff] }
 0x783   : > { %v2378_v46 = vpack.c.bf16 %v2328_v44, %v2327_v24 }
 0x785   : > { %2767 = vmatpush3.bf16.msra.mxu0 %v2351_v36  ;;  %v2312_v36 = vld [vmem:[#allocation8 + $0x258] sm:$0xff] }
 0x786   : > { %2768 = vmatprep.subr.bf16.mxu0 %v2360_v47  ;;  %v2329_v47 = vld [vmem:[#allocation8 + $0x2e0] sm:$0xff]  ;;  %v2370_v51 = vpack.c.bf16 %v2312_v36, %v2311_v40 }
 0x787   : > { %v2379_v29 = vpack.c.bf16 %v2330_v50, %v2329_v47 }
 0x789   : > { %2769 = vmatpush3.bf16.msra.mxu0 %v2352_v54  ;;  %v2314_v54 = vld [vmem:[#allocation8 + $0x268] sm:$0xff] }
 0x78a   : > { %2770 = vmatprep.subr.bf16.mxu0 %v2361_v38  ;;  %v2331_v38 = vld [vmem:[#allocation8 + $0x2f0] sm:$0xff]  ;;  %v2371_v58 = vpack.c.bf16 %v2314_v54, %v2313_v32 }
 0x78b   : > { %v2380_v59 = vpack.c.bf16 %v2332_v55, %v2331_v38 }
 0x78d   : > { %2771 = vmatpush3.bf16.msra.mxu0 %v2353_v6  ;;  %v2316_v6 = vld [vmem:[#allocation8 + $0x278] sm:$0xff] }
 0x78e   : > { %2772 = vmatprep.subr.bf16.mxu0 %v2362_v10  ;;  %v2372_v10 = vpack.c.bf16 %v2316_v6, %v2315_v60 }
 0x791   : > { %2773 = vmatpush3.bf16.msra.mxu0 %v2354_v18 }
 0x792   : > { %2774 = vmatprep.subr.bf16.mxu0 %v2363_v0 }
 0x795   : > { %2775 = vmatpush3.bf16.msra.mxu0 %v2355_v4 }
 0x796   : > { %2776 = vmatprep.subr.bf16.mxu0 %v2364_v5 }
 0x799   : > { %2777 = vmatpush3.bf16.msra.mxu0 %v2356_v12 }
 0x79a   : > { %2784 = vmatprep.subr.bf16.mxu0 %v2373_v14 }
 0x79c   : > { %2455 = vmatmul.mubr.bf16.vlgmr.msra.gmra.mrb[24].mxu0 %v3851_v37  ;;  %v2368_v37 = vpack.c.bf16 %v2308_v35, %v2307_v49 }
 0x79d   : > { %2785 = vmatpush3.bf16.msra.mxu0 %v2365_v53  ;;  %2495 = vmatprep.mubr.bf16.mxu0 %v3855_v9  ;;  %v2309_v9 = vld [vmem:[#allocation8 + $0x240] sm:$0xff] }
 0x79e   : > { %2786 = vmatprep.subr.bf16.mxu0 %v2374_v56  ;;  %v2369_v45 = vpack.c.bf16 %v2310_v28, %v2309_v9 }
 0x7a1   : > { %2787 = vmatpush3.bf16.msra.mxu0 %v2366_v26 }
 0x7a2   : > { %2788 = vmatprep.subr.bf16.mxu0 %v2375_v27 }
 0x7a5   : > { %2789 = vmatpush3.bf16.msra.mxu0 %v2367_v33 }
 0x7a6   : > { %2790 = vmatprep.subr.bf16.mxu0 %v2376_v34 }
 0x7a9   : > { %2791 = vmatpush3.bf16.msra.mxu0 %v2368_v37 }
 0x7aa   : > { %2792 = vmatprep.subr.bf16.mxu0 %v2377_v15 }
 0x7ad   : > { %2793 = vmatpush3.bf16.msra.mxu0 %v2369_v45 }
 0x7ae   : > { %2794 = vmatprep.subr.bf16.mxu0 %v2378_v46 }
 0x7b1   : > { %2795 = vmatpush3.bf16.msra.mxu0 %v2370_v51 }
 0x7b2   : > { %2796 = vmatprep.subr.bf16.mxu0 %v2379_v29 }
 0x7b5   : > { %2797 = vmatpush3.bf16.msra.mxu0 %v2371_v58 }
 0x7b6   : > { %2798 = vmatprep.subr.bf16.mxu0 %v2380_v59 }
 0x7b9   : > { %2799 = vmatpush3.bf16.msra.mxu0 %v2372_v10 }
 0x7bc   : > { %2496 = vmatmul.mubr.bf16.vlgmr.msra.gmra.mrb[28].mxu0 %v3857_v42  ;;  %v2699_v42 = vld [vmem:[%s3928_s12] ss:$0 sm:$0xff] }
 0x84f   : > { %v2756_v61 = vpop.f32.mrb[20].mxu0 }
 0x850   : > { %v2757_v62 = vpop.f32.mrb[21].mxu0 }
 0x851   : > { %v2758_v63 = vadd.f32 %v2757_v62, %v2756_v61  ;;  %v2759_v16 = vpop.f32.mrb[22].mxu0 }
 0x852   : > { %v2760_v18 = vpop.f32.mrb[23].mxu0 }
 0x853   : > { %v2761_v0 = vadd.f32 %v2760_v18, %v2759_v16 }
 0x86f   : > { %v2778_v57 = vpop.f32.mrb[24].mxu0 }
 0x870   : > { %v2779_v1 = vpop.f32.mrb[25].mxu0 }
 0x871   : > { %v2780_v52 = vadd.f32 %v2779_v1, %v2778_v57  ;;  %v2781_v3 = vpop.f32.mrb[26].mxu0 }
 0x872   : > { %v2782_v4 = vpop.f32.mrb[27].mxu0 }
 0x873   : > { %v2457_v5 = vadd.f32 %v2780_v52, %v2758_v63  ;;  %v2783_v8 = vadd.f32 %v2782_v4, %v2781_v3 }
 0x875   : > { %v2460_v11 = vadd.f32 %v2783_v8, %v2761_v0 }
 0x88f   : > { %v2800_v41 = vpop.f32.mrb[28].mxu0 }
 0x890   : > { %v2801_v43 = vpop.f32.mrb[29].mxu0 }
 0x891   : > { %v2802_v12 = vadd.f32 %v2801_v43, %v2800_v41  ;;  %v2803_v14 = vpop.f32.mrb[30].mxu0 }
 0x892   : > { %v2804_v13 = vpop.f32.mrb[31].mxu0 }
 0x893   : > { %v2498_v17 = vadd.f32 %v2802_v12, %v2457_v5  ;;  %v2805_v19 = vadd.f32 %v2804_v13, %v2803_v14 }
 0x895   : > { %v2511_v53 = vmul.f32 %v2699_v42, %v2498_v17  ;;  %v2501_v56 = vadd.f32 %v2805_v19, %v2460_v11 }
 0x897   : > { %v2520_v22 = vadd.f32 %v2700_v20, %v2511_v53  ;;  %v2512_v23 = vmul.f32 %v2699_v42, %v2501_v56 }
 0x899   : > { %v2522_v21 = vmax.f32 %v2520_v22, 0.0  ;;  %v2521_v25 = vadd.f32 %v2700_v20, %v2512_v23 }
 0x89b   : > { %v2523_v26 = vmax.f32 %v2521_v25, 0.0  ;;  %v2526_v27 = vrot.slane %v2522_v21, 1 }
 0x89d   : > { %v2527_v2 = vrot.slane %v2523_v26, 1 }
 0x89f   : > { %v2528_v30 = vsel %vm532_vm0, %v2526_v27, %v2527_v2 }
 0x8a0   : > { %v2530_v7 = vmax.f32 %v2522_v21, %v2528_v30 }
 0x8a2   : > { %2531 = vst [vmem:[%s519_s29] sm:$0xff] %v2530_v7 }
 0x8a3   : > { %3239 = shalt.err (!%p3236_p0)
}
 0x8a4   : > { %s3240_s7 = scalar_lea.hbm %s3874_s16, 128  ;;  %s3244_s28 = scalar_lea.hbm %s3976_s27, 256 }
 0x8a5   : > { %p3241_p6 = scmp.ne.s32.totalorder %s3874_s16, %s3240_s7  ;;  %p3245_p13 = scmp.lt.u32.totalorder %s3874_s16, %s3976_s27 }
 0x8a6   : > { %p3246_p12 = scmp.lt.u32.totalorder %s3244_s28, %s3240_s7  ;;  %p3248_p2 = scmp.lt.u32.totalorder %s3240_s7, %s3874_s16 }
 0x8a7   : > { %p3242_p9 = pnand %p3241_p6, %p3977_p3 }
 0x8a8   : > { %p3247_p1 = por %p3246_p12, %p3245_p13 }
 0x8a9   : > { %p3243_p10 = pneg %p3242_p9 }
 0x8aa   : > { %p3249_p4 = por %p3248_p2, %p3247_p1 }
 0x8ac   : > { %p3250_p7 = pnand %p3249_p4, %p3243_p10 }
 0x8ae   : > { %3253 = shalt.err (!%p3250_p7)
}
 0x8af   : > { %2938 = dma.vmem_to_hbm [thread:$0]  (%p3977_p3), %s3876_s19, 128, %s3874_s16, %s2533_s20  }
 0x8b0 PF: > { %s3978_s29 = sld [smem:[#allocation17_spill]]  ;;  %s3979_s21 = sld [smem:[#allocation15_spill]] }
 0x8b1   : > { %s3980_s22 = sld [smem:[#allocation21_spill]] }
 0x8b6   : > { %p2965_p8 = scmp.ge.s32.totalorder %s3978_s29, 2  ;;  %s2558_s23 = sand.u32 1, %s3979_s21  }
 0x8b7   : > { %p3981_p11 = scmp.ne.s32.totalorder %s3980_s22, 0  ;;  %s2559_s17 = scalar_lea.sflag [#allocation4], %s2558_s23 }
 0x8b9   : > { %p2954_p5 = pnand %p2965_p8, %p3981_p11 }
 0x8bb   : > { %3283 = dma.done.wait (!%p2954_p5), %s2559_s17, 128  }
 0x8bc   : > { %3285 = vsyncadd (!%p2954_p5), %s2559_s17, 4294967168  ;;  %s3982_s16 = sld [smem:[#allocation18_spill]]  ;;  %s3983_s15 = sld [smem:[#allocation16_spill]] }
 0x8bd   : > { %s3984_s14 = sld [smem:[#allocation19_spill]]  ;;  %s3985_s29 = smov %s3292_s30 }
 0x8c2   : > { %p27_p0 = scmp.ge.s32.totalorder %s3982_s16, 4   ;;  %s3986_s30 = smov %s3983_s15 }
 0x8c3   : > { %s3987_s15 = smov %s3984_s14 }
 0x8c4   :  { %29 = sbr.rel (!%p27_p0) target bundleno = 10 (0xa), region = 128 }
 0x8cb   :  { %2564 = vsyncpa [#allocation3], 1 }
 0x8cc   :  { %2566 = vsyncpa [#allocation3 + $0x1], 1 }
 0x8cd   :  { %2567 = vsyncpa [#allocation6], 1 }
 0x8ce   :  { %2568 = vsyncpa [#allocation9], 1 }
 0x8cf   :  { %2569 = vsyncpa [#allocation4], 1 }
 0x8d0   :  { %2571 = vsyncpa [#allocation4 + $0x1], 1 }

</bundles_post_ra>
